<compile_context>
chip_gen: v7x
topology: tpu7x:2x2x1
jax: 0.10.0
libtpu: 0.0.40
codegen_flags: <defaults>
</compile_context>

<pallas_src>
import numpy as np
import jax
import jax.numpy as jnp
from jax import lax
from jax.experimental import pallas as pl
from jax.experimental.pallas import tpu as pltpu


# ---------------------------------------------------------------------------
# Pallas kernel: whole forward pass in one program.
# ---------------------------------------------------------------------------
def qnet_lstm_kernel(
    xcat_ref,                       # (T*BP, S+2A) bf16  time-major [state|action|last_action]
    h0_ref, c0_ref,                 # (BP, H) f32
    w12_ref, b12_ref,               # (S+2A, 2H) bf16, (1, 2H) f32   fused fc1|fc2
    wih_ref, whh_ref, bg_ref,       # (H, 4H) bf16, (H, 4H) bf16, (1, 4H) f32; gates (i,f,o,g)
    w3_ref, b3_ref,                 # (2H, H) bf16, (1, H) f32
    wq_ref, bq_ref,                 # (H, 1) bf16, (1, 1) f32
    q_ref, hout_ref, cout_ref,      # (T*BP, 1) f32, (BP, H) f32, (BP, H) f32
    gates_sc,                       # (T, BP, 4H) f32 scratch: precomputed i2h gate pre-acts
    merged_sc,                      # (T, BP, 2H) f32 scratch: [fc_branch | lstm hidden]
):
    BP, H = h0_ref.shape
    T = gates_sc.shape[0]
    TB = T * BP

    # ---- hoisted prologue: ONE fused matmul produces fc1 and fc2 pre-acts ----
    act12 = jnp.maximum(
        jnp.dot(xcat_ref[...], w12_ref[...], preferred_element_type=jnp.float32)
        + b12_ref[...],
        0.0,
    )  # (TB, 2H): [:, :H] = fc_branch, [:, H:] = lstm input

    # Input-to-hidden gate pre-activations for every timestep (+ both LSTM
    # biases), parked in sublane-aligned per-timestep (BP, 4H) tiles.
    gates_sc[...] = (
        jnp.dot(act12[:, H:].astype(jnp.bfloat16), wih_ref[...],
                preferred_element_type=jnp.float32)
        + bg_ref[...]
    ).reshape(T, BP, 4 * H)

    # Pre-fill the merged slab with [fc_branch | lstm_in]; the recurrence below
    # overwrites the second half with the per-timestep hidden state.
    merged_sc[...] = act12.reshape(T, BP, 2 * H)

    whh = whh_ref[...]

    # ---- sequential LSTM recurrence (reordered gate columns: i, f, o, g) ----
    def step(t, carry):
        h, c = carry
        g = gates_sc[t] + jnp.dot(h.astype(jnp.bfloat16), whh,
                                  preferred_element_type=jnp.float32)
        sig = jax.nn.sigmoid(g[:, : 3 * H])       # one EUP pass for i, f, o
        i_g = sig[:, 0 * H:1 * H]
        f_g = sig[:, 1 * H:2 * H]
        o_g = sig[:, 2 * H:3 * H]
        g_g = jnp.tanh(g[:, 3 * H:])
        c_new = f_g * c + i_g * g_g
        h_new = o_g * jnp.tanh(c_new)
        merged_sc[t, :, H:2 * H] = h_new          # full-tile aligned store
        return (h_new, c_new)

    h_fin, c_fin = lax.fori_loop(
        0, T, step, (h0_ref[...], c0_ref[...]), unroll=True
    )
    hout_ref[...] = h_fin
    cout_ref[...] = c_fin

    # ---- hoisted epilogue: fc3 as one K=2H contraction, then q head ----
    merged = merged_sc[...].reshape(TB, 2 * H)
    x3 = jnp.maximum(
        jnp.dot(merged.astype(jnp.bfloat16), w3_ref[...],
                preferred_element_type=jnp.float32)
        + b3_ref[...],
        0.0,
    )
    q_ref[...] = (
        jnp.dot(x3.astype(jnp.bfloat16), wq_ref[...],
                preferred_element_type=jnp.float32)
        + bq_ref[...]
    )


# ---------------------------------------------------------------------------
# Wrapper: layout plumbing + pallas_call.
# ---------------------------------------------------------------------------
def q_network_lstm_forward(params, state, action, last_action, hidden_in):
    h0, c0 = hidden_in                          # (1, B, H) each
    B, T, S = state.shape
    A = action.shape[-1]
    H = params["w1"].shape[1]
    BP = ((B + 7) // 8) * 8                     # pad batch to the f32 sublane tile
    TB = T * BP

    def time_major_pad(x):                      # (B, T, D) -> (T, BP, D)
        x = jnp.transpose(x, (1, 0, 2))
        return jnp.pad(x, ((0, 0), (0, BP - B), (0, 0)))

    xcat = jnp.concatenate(
        [time_major_pad(state), time_major_pad(action), time_major_pad(last_action)],
        axis=-1,
    ).reshape(TB, S + 2 * A).astype(jnp.bfloat16)

    h0p = jnp.pad(h0[0], ((0, BP - B), (0, 0)))
    c0p = jnp.pad(c0[0], ((0, BP - B), (0, 0)))

    # Fused fc1/fc2 weight so the cat([state, action]) / cat([state, last_action])
    # tensors never exist and both layers come from one MXU pass:
    #   [xs|xa|xl] @ [[w1s, w2s], [w1a, 0], [0, w2a]]
    w1, w2 = params["w1"], params["w2"]
    zAH = jnp.zeros((A, H), jnp.float32)
    w12 = jnp.concatenate(
        [jnp.concatenate([w1[:S], w2[:S]], axis=1),
         jnp.concatenate([w1[S:], zAH], axis=1),
         jnp.concatenate([zAH, w2[S:]], axis=1)],
        axis=0,
    ).astype(jnp.bfloat16)
    b12 = jnp.concatenate([params["b1"], params["b2"]]).reshape(1, 2 * H)

    # LSTM: pre-sum both biases and permute gate columns (i,f,g,o) -> (i,f,o,g)
    # so the kernel applies one sigmoid to 3H contiguous lanes + one tanh to H.
    def reorder(w):
        i, f, g, o = jnp.split(w, 4, axis=-1)
        return jnp.concatenate([i, f, o, g], axis=-1)

    w_ih = reorder(params["w_ih"]).astype(jnp.bfloat16)
    w_hh = reorder(params["w_hh"]).astype(jnp.bfloat16)
    b_g = reorder((params["b_ih"] + params["b_hh"]).reshape(1, 4 * H))

    w3 = params["w3"].astype(jnp.bfloat16)      # rows [:H] for fc_branch, [H:] for lstm
    wq = params["wq"].astype(jnp.bfloat16)

    vmem = pl.BlockSpec(memory_space=pltpu.MemorySpace.VMEM)

    q_flat, h_n, c_n = pl.pallas_call(
        qnet_lstm_kernel,
        out_shape=[
            jax.ShapeDtypeStruct((TB, 1), jnp.float32),
            jax.ShapeDtypeStruct((BP, H), jnp.float32),
            jax.ShapeDtypeStruct((BP, H), jnp.float32),
        ],
        in_specs=[vmem] * 12,
        out_specs=[vmem] * 3,
        scratch_shapes=[
            pltpu.VMEM((T, BP, 4 * H), jnp.float32),   # i2h gate pre-acts, per-timestep tiles
            pltpu.VMEM((T, BP, 2 * H), jnp.float32),   # [fc_branch | lstm hidden] slab
        ],
    )(
        xcat, h0p, c0p,
        w12, b12,
        w_ih, w_hh, b_g,
        w3, params["b3"].reshape(1, H),
        wq, params["bq"].reshape(1, 1),
    )

    q_out = jnp.transpose(q_flat.reshape(T, BP, 1)[:, :B], (1, 0, 2))   # (B, T, 1)
    return q_out, (h_n[:B][None], c_n[:B][None])


# ---------------------------------------------------------------------------
# Pure-JAX f32 reference (semantics of the PyTorch forward) for verification.
# ---------------------------------------------------------------------------
def reference_forward(params, state, action, last_action, hidden_in):
    h0, c0 = hidden_in
    H = params["w1"].shape[1]
    st = jnp.transpose(state, (1, 0, 2))
    ac = jnp.transpose(action, (1, 0, 2))
    la = jnp.transpose(last_action, (1, 0, 2))

    fc_branch = jax.nn.relu(jnp.concatenate([st, ac], -1) @ params["w1"] + params["b1"])
    lstm_in = jax.nn.relu(jnp.concatenate([st, la], -1) @ params["w2"] + params["b2"])

    def step(carry, x_t):
        h, c = carry
        gates = x_t @ params["w_ih"] + params["b_ih"] + h @ params["w_hh"] + params["b_hh"]
        i_g = jax.nn.sigmoid(gates[:, :H])
        f_g = jax.nn.sigmoid(gates[:, H:2 * H])
        g_g = jnp.tanh(gates[:, 2 * H:3 * H])
        o_g = jax.nn.sigmoid(gates[:, 3 * H:])
        c = f_g * c + i_g * g_g
        h = o_g * jnp.tanh(c)
        return (h, c), h

    (h_n, c_n), lstm_out = lax.scan(step, (h0[0], c0[0]), lstm_in)
    merged = jnp.concatenate([fc_branch, lstm_out], -1)
    x = jax.nn.relu(merged @ params["w3"] + params["b3"])
    q = x @ params["wq"] + params["bq"]
    return jnp.transpose(q, (1, 0, 2)), (h_n[None], c_n[None])


# ---------------------------------------------------------------------------
# Deterministic parameter init (PyTorch shapes, stored pre-transposed:
# Linear weight (out,in) -> kernel uses (in,out); LSTM gate order (i,f,g,o)).
# ---------------------------------------------------------------------------
def init_params(key, state_dim, action_dim, hidden, init_w=0.003):
    in_dim = state_dim + action_dim
    keys = jax.random.split(key, 12)

    def u(k, shape, bound):
        return jax.random.uniform(k, shape, jnp.float32, -bound, bound)

    b_fc = 1.0 / np.sqrt(in_dim)
    b_h = 1.0 / np.sqrt(hidden)
    b_m = 1.0 / np.sqrt(2 * hidden)
    return {
        "w1": u(keys[0], (in_dim, hidden), b_fc), "b1": u(keys[1], (hidden,), b_fc),
        "w2": u(keys[2], (in_dim, hidden), b_fc), "b2": u(keys[3], (hidden,), b_fc),
        "w_ih": u(keys[4], (hidden, 4 * hidden), b_h), "b_ih": u(keys[5], (4 * hidden,), b_h),
        "w_hh": u(keys[6], (hidden, 4 * hidden), b_h), "b_hh": u(keys[7], (4 * hidden,), b_h),
        "w3": u(keys[8], (2 * hidden, hidden), b_m), "b3": u(keys[9], (hidden,), b_m),
        "wq": u(keys[10], (hidden, 1), init_w), "bq": u(keys[11], (1,), init_w),
    }


if __name__ == "__main__":
    B, T = 2, 8
    STATE_DIM, ACTION_DIM, HIDDEN = 50, 4, 128   # hidden_size=128 is the module default

    root = jax.random.PRNGKey(0)
    kp, ks, ka, kl, kh, kc = jax.random.split(root, 6)
    params = init_params(kp, STATE_DIM, ACTION_DIM, HIDDEN)

    state = jax.random.normal(ks, (B, T, STATE_DIM), jnp.float32)
    action = jax.random.normal(ka, (B, T, ACTION_DIM), jnp.float32)
    last_action = jax.random.normal(kl, (B, T, ACTION_DIM), jnp.float32)
    h0 = jax.random.normal(kh, (1, B, HIDDEN), jnp.float32) * 0.1
    c0 = jax.random.normal(kc, (1, B, HIDDEN), jnp.float32) * 0.1

    q_out, (h_n, c_n) = jax.jit(q_network_lstm_forward)(
        params, state, action, last_action, (h0, c0)
    )
    jax.block_until_ready((q_out, h_n, c_n))

    # f32 reference; tolerances accommodate bf16 matmul operands (f32 accumulation,
    # f32 nonlinearities/state) per the perf review.
    q_ref, (h_ref, c_ref) = reference_forward(params, state, action, last_action, (h0, c0))
    np.testing.assert_allclose(np.asarray(q_out), np.asarray(q_ref), rtol=2e-2, atol=5e-3)
    np.testing.assert_allclose(np.asarray(h_n), np.asarray(h_ref), rtol=2e-2, atol=5e-3)
    np.testing.assert_allclose(np.asarray(c_n), np.asarray(c_ref), rtol=2e-2, atol=5e-3)

    assert q_out.shape == (B, T, 1)
    assert h_n.shape == (1, B, HIDDEN) and c_n.shape == (1, B, HIDDEN)
    print("KERNEL_OK")
</pallas_src>

<mosaic_0001>
module attributes {stable_mosaic.version = 11 : i64} {
  func.func @qnet_lstm_kernel(%arg0: memref<64x58xbf16, #tpu.memory_space<vmem>>, %arg1: memref<8x128xf32, #tpu.memory_space<vmem>>, %arg2: memref<8x128xf32, #tpu.memory_space<vmem>>, %arg3: memref<58x256xbf16, #tpu.memory_space<vmem>>, %arg4: memref<1x256xf32, #tpu.memory_space<vmem>>, %arg5: memref<128x512xbf16, #tpu.memory_space<vmem>>, %arg6: memref<128x512xbf16, #tpu.memory_space<vmem>>, %arg7: memref<1x512xf32, #tpu.memory_space<vmem>>, %arg8: memref<256x128xbf16, #tpu.memory_space<vmem>>, %arg9: memref<1x128xf32, #tpu.memory_space<vmem>>, %arg10: memref<128x1xbf16, #tpu.memory_space<vmem>>, %arg11: memref<1x1xf32, #tpu.memory_space<vmem>>, %arg12: memref<64x1xf32, #tpu.memory_space<vmem>>, %arg13: memref<8x128xf32, #tpu.memory_space<vmem>>, %arg14: memref<8x128xf32, #tpu.memory_space<vmem>>, %arg15: memref<8x8x512xf32, #tpu.memory_space<vmem>>, %arg16: memref<8x8x256xf32, #tpu.memory_space<vmem>>) attributes {dimension_semantics = [], scalar_prefetch = 0 : i64, scratch_operands = 2 : i64, tpu.core_type = #tpu.core_type<tc>} {
    %c0 = arith.constant 0 : index
    %c0_0 = arith.constant 0 : index
    %0 = vector.load %arg0[%c0, %c0_0] : memref<64x58xbf16, #tpu.memory_space<vmem>>, vector<64x58xbf16>
    %c0_1 = arith.constant 0 : index
    %c0_2 = arith.constant 0 : index
    %1 = vector.load %arg3[%c0_1, %c0_2] : memref<58x256xbf16, #tpu.memory_space<vmem>>, vector<58x256xbf16>
    %cst = arith.constant dense<0.000000e+00> : vector<64x256xf32>
    %2 = tpu.matmul %0, %1, %cst {dimension_numbers = #tpu.dot_dimension_numbers<[1], [0], [0], [1], [0, 0, 1, 1], [], []>} : vector<64x58xbf16>, vector<58x256xbf16>, vector<64x256xf32> -> vector<64x256xf32>
    %c0_3 = arith.constant 0 : index
    %c0_4 = arith.constant 0 : index
    %3 = vector.load %arg4[%c0_3, %c0_4] : memref<1x256xf32, #tpu.memory_space<vmem>>, vector<1x256xf32>
    %4 = vector.broadcast %3 : vector<1x256xf32> to vector<64x256xf32>
    %5 = arith.addf %2, %4 : vector<64x256xf32>
    %cst_5 = arith.constant 0.000000e+00 : f32
    %6 = vector.broadcast %cst_5 : f32 to vector<64x256xf32>
    %7 = arith.maximumf %5, %6 : vector<64x256xf32>
    %8 = vector.extract_strided_slice %7 {offsets = [0, 128], sizes = [64, 128], strides = [1, 1]} : vector<64x256xf32> to vector<64x128xf32>
    %9 = arith.truncf %8 : vector<64x128xf32> to vector<64x128xbf16>
    %c0_6 = arith.constant 0 : index
    %c0_7 = arith.constant 0 : index
    %10 = vector.load %arg5[%c0_6, %c0_7] : memref<128x512xbf16, #tpu.memory_space<vmem>>, vector<128x512xbf16>
    %cst_8 = arith.constant dense<0.000000e+00> : vector<64x512xf32>
    %11 = tpu.matmul %9, %10, %cst_8 {dimension_numbers = #tpu.dot_dimension_numbers<[1], [0], [0], [1], [0, 0, 1, 1], [], []>} : vector<64x128xbf16>, vector<128x512xbf16>, vector<64x512xf32> -> vector<64x512xf32>
    %c0_9 = arith.constant 0 : index
    %c0_10 = arith.constant 0 : index
    %12 = vector.load %arg7[%c0_9, %c0_10] : memref<1x512xf32, #tpu.memory_space<vmem>>, vector<1x512xf32>
    %13 = vector.broadcast %12 : vector<1x512xf32> to vector<64x512xf32>
    %14 = arith.addf %11, %13 : vector<64x512xf32>
    %15 = vector.shape_cast %14 : vector<64x512xf32> to vector<8x8x512xf32>
    %c0_11 = arith.constant 0 : index
    %c0_12 = arith.constant 0 : index
    %c0_13 = arith.constant 0 : index
    %16 = vector.load %arg15[%c0_11, %c0_12, %c0_13] : memref<8x8x512xf32, #tpu.memory_space<vmem>>, vector<8x8x512xf32>
    tpu.vector_store %arg15[%c0_11, %c0_12, %c0_13], %15 {strides = array<i32>} : memref<8x8x512xf32, #tpu.memory_space<vmem>>, vector<8x8x512xf32>,
    %17 = vector.shape_cast %7 : vector<64x256xf32> to vector<8x8x256xf32>
    %c0_14 = arith.constant 0 : index
    %c0_15 = arith.constant 0 : index
    %c0_16 = arith.constant 0 : index
    %18 = vector.load %arg16[%c0_14, %c0_15, %c0_16] : memref<8x8x256xf32, #tpu.memory_space<vmem>>, vector<8x8x256xf32>
    tpu.vector_store %arg16[%c0_14, %c0_15, %c0_16], %17 {strides = array<i32>} : memref<8x8x256xf32, #tpu.memory_space<vmem>>, vector<8x8x256xf32>,
    %c0_17 = arith.constant 0 : index
    %c0_18 = arith.constant 0 : index
    %19 = vector.load %arg6[%c0_17, %c0_18] : memref<128x512xbf16, #tpu.memory_space<vmem>>, vector<128x512xbf16>
    %c0_19 = arith.constant 0 : index
    %c0_20 = arith.constant 0 : index
    %20 = vector.load %arg1[%c0_19, %c0_20] : memref<8x128xf32, #tpu.memory_space<vmem>>, vector<8x128xf32>
    %c0_21 = arith.constant 0 : index
    %c0_22 = arith.constant 0 : index
    %21 = vector.load %arg2[%c0_21, %c0_22] : memref<8x128xf32, #tpu.memory_space<vmem>>, vector<8x128xf32>
    %c0_i32 = arith.constant 0 : i32
    %22 = arith.index_cast %c0_i32 : i32 to index
    %c0_23 = arith.constant 0 : index
    %c0_24 = arith.constant 0 : index
    %23 = vector.load %arg15[%22, %c0_23, %c0_24] : memref<8x8x512xf32, #tpu.memory_space<vmem>>, vector<1x8x512xf32>
    %24 = vector.shape_cast %23 : vector<1x8x512xf32> to vector<8x512xf32>
    %25 = arith.truncf %20 : vector<8x128xf32> to vector<8x128xbf16>
    %cst_25 = arith.constant dense<0.000000e+00> : vector<8x512xf32>
    %26 = tpu.matmul %25, %19, %cst_25 {dimension_numbers = #tpu.dot_dimension_numbers<[1], [0], [0], [1], [0, 0, 1, 1], [], []>} : vector<8x128xbf16>, vector<128x512xbf16>, vector<8x512xf32> -> vector<8x512xf32>
    %27 = arith.addf %24, %26 : vector<8x512xf32>
    %28 = vector.extract_strided_slice %27 {offsets = [0, 0], sizes = [8, 384], strides = [1, 1]} : vector<8x512xf32> to vector<8x384xf32>
    %29 = arith.negf %28 : vector<8x384xf32>
    %30 = math.exp %29 : vector<8x384xf32>
    %cst_26 = arith.constant 1.000000e+00 : f32
    %31 = vector.broadcast %cst_26 : f32 to vector<8x384xf32>
    %32 = arith.addf %31, %30 : vector<8x384xf32>
    %33 = arith.divf %31, %32 : vector<8x384xf32>
    %34 = vector.extract_strided_slice %33 {offsets = [0, 0], sizes = [8, 128], strides = [1, 1]} : vector<8x384xf32> to vector<8x128xf32>
    %35 = vector.extract_strided_slice %33 {offsets = [0, 128], sizes = [8, 128], strides = [1, 1]} : vector<8x384xf32> to vector<8x128xf32>
    %36 = vector.extract_strided_slice %33 {offsets = [0, 256], sizes = [8, 128], strides = [1, 1]} : vector<8x384xf32> to vector<8x128xf32>
    %37 = vector.extract_strided_slice %27 {offsets = [0, 384], sizes = [8, 128], strides = [1, 1]} : vector<8x512xf32> to vector<8x128xf32>
    %38 = math.tanh %37 : vector<8x128xf32>
    %39 = arith.mulf %35, %21 : vector<8x128xf32>
    %40 = arith.mulf %34, %38 : vector<8x128xf32>
    %41 = arith.addf %39, %40 : vector<8x128xf32>
    %42 = math.tanh %41 : vector<8x128xf32>
    %43 = arith.mulf %36, %42 : vector<8x128xf32>
    %44 = arith.index_cast %c0_i32 : i32 to index
    %c0_27 = arith.constant 0 : index
    %c128 = arith.constant 128 : index
    %45 = vector.load %arg16[%44, %c0_27, %c128] : memref<8x8x256xf32, #tpu.memory_space<vmem>>, vector<1x8x128xf32>
    %46 = vector.shape_cast %45 : vector<1x8x128xf32> to vector<8x128xf32>
    %47 = vector.shape_cast %43 : vector<8x128xf32> to vector<1x8x128xf32>
    tpu.vector_store %arg16[%44, %c0_27, %c128], %47 {strides = array<i32>} : memref<8x8x256xf32, #tpu.memory_space<vmem>>, vector<1x8x128xf32>,
    %c1_i32 = arith.constant 1 : i32
    %48 = arith.index_cast %c1_i32 : i32 to index
    %c0_28 = arith.constant 0 : index
    %c0_29 = arith.constant 0 : index
    %49 = vector.load %arg15[%48, %c0_28, %c0_29] : memref<8x8x512xf32, #tpu.memory_space<vmem>>, vector<1x8x512xf32>
    %50 = vector.shape_cast %49 : vector<1x8x512xf32> to vector<8x512xf32>
    %51 = arith.truncf %43 : vector<8x128xf32> to vector<8x128xbf16>
    %cst_30 = arith.constant dense<0.000000e+00> : vector<8x512xf32>
    %52 = tpu.matmul %51, %19, %cst_30 {dimension_numbers = #tpu.dot_dimension_numbers<[1], [0], [0], [1], [0, 0, 1, 1], [], []>} : vector<8x128xbf16>, vector<128x512xbf16>, vector<8x512xf32> -> vector<8x512xf32>
    %53 = arith.addf %50, %52 : vector<8x512xf32>
    %54 = vector.extract_strided_slice %53 {offsets = [0, 0], sizes = [8, 384], strides = [1, 1]} : vector<8x512xf32> to vector<8x384xf32>
    %55 = arith.negf %54 : vector<8x384xf32>
    %56 = math.exp %55 : vector<8x384xf32>
    %cst_31 = arith.constant 1.000000e+00 : f32
    %57 = vector.broadcast %cst_31 : f32 to vector<8x384xf32>
    %58 = arith.addf %57, %56 : vector<8x384xf32>
    %59 = arith.divf %57, %58 : vector<8x384xf32>
    %60 = vector.extract_strided_slice %59 {offsets = [0, 0], sizes = [8, 128], strides = [1, 1]} : vector<8x384xf32> to vector<8x128xf32>
    %61 = vector.extract_strided_slice %59 {offsets = [0, 128], sizes = [8, 128], strides = [1, 1]} : vector<8x384xf32> to vector<8x128xf32>
    %62 = vector.extract_strided_slice %59 {offsets = [0, 256], sizes = [8, 128], strides = [1, 1]} : vector<8x384xf32> to vector<8x128xf32>
    %63 = vector.extract_strided_slice %53 {offsets = [0, 384], sizes = [8, 128], strides = [1, 1]} : vector<8x512xf32> to vector<8x128xf32>
    %64 = math.tanh %63 : vector<8x128xf32>
    %65 = arith.mulf %61, %41 : vector<8x128xf32>
    %66 = arith.mulf %60, %64 : vector<8x128xf32>
    %67 = arith.addf %65, %66 : vector<8x128xf32>
    %68 = math.tanh %67 : vector<8x128xf32>
    %69 = arith.mulf %62, %68 : vector<8x128xf32>
    %70 = arith.index_cast %c1_i32 : i32 to index
    %c0_32 = arith.constant 0 : index
    %c128_33 = arith.constant 128 : index
    %71 = vector.load %arg16[%70, %c0_32, %c128_33] : memref<8x8x256xf32, #tpu.memory_space<vmem>>, vector<1x8x128xf32>
    %72 = vector.shape_cast %71 : vector<1x8x128xf32> to vector<8x128xf32>
    %73 = vector.shape_cast %69 : vector<8x128xf32> to vector<1x8x128xf32>
    tpu.vector_store %arg16[%70, %c0_32, %c128_33], %73 {strides = array<i32>} : memref<8x8x256xf32, #tpu.memory_space<vmem>>, vector<1x8x128xf32>,
    %c2_i32 = arith.constant 2 : i32
    %74 = arith.index_cast %c2_i32 : i32 to index
    %c0_34 = arith.constant 0 : index
    %c0_35 = arith.constant 0 : index
    %75 = vector.load %arg15[%74, %c0_34, %c0_35] : memref<8x8x512xf32, #tpu.memory_space<vmem>>, vector<1x8x512xf32>
    %76 = vector.shape_cast %75 : vector<1x8x512xf32> to vector<8x512xf32>
    %77 = arith.truncf %69 : vector<8x128xf32> to vector<8x128xbf16>
    %cst_36 = arith.constant dense<0.000000e+00> : vector<8x512xf32>
    %78 = tpu.matmul %77, %19, %cst_36 {dimension_numbers = #tpu.dot_dimension_numbers<[1], [0], [0], [1], [0, 0, 1, 1], [], []>} : vector<8x128xbf16>, vector<128x512xbf16>, vector<8x512xf32> -> vector<8x512xf32>
    %79 = arith.addf %76, %78 : vector<8x512xf32>
    %80 = vector.extract_strided_slice %79 {offsets = [0, 0], sizes = [8, 384], strides = [1, 1]} : vector<8x512xf32> to vector<8x384xf32>
    %81 = arith.negf %80 : vector<8x384xf32>
    %82 = math.exp %81 : vector<8x384xf32>
    %cst_37 = arith.constant 1.000000e+00 : f32
    %83 = vector.broadcast %cst_37 : f32 to vector<8x384xf32>
    %84 = arith.addf %83, %82 : vector<8x384xf32>
    %85 = arith.divf %83, %84 : vector<8x384xf32>
    %86 = vector.extract_strided_slice %85 {offsets = [0, 0], sizes = [8, 128], strides = [1, 1]} : vector<8x384xf32> to vector<8x128xf32>
    %87 = vector.extract_strided_slice %85 {offsets = [0, 128], sizes = [8, 128], strides = [1, 1]} : vector<8x384xf32> to vector<8x128xf32>
    %88 = vector.extract_strided_slice %85 {offsets = [0, 256], sizes = [8, 128], strides = [1, 1]} : vector<8x384xf32> to vector<8x128xf32>
    %89 = vector.extract_strided_slice %79 {offsets = [0, 384], sizes = [8, 128], strides = [1, 1]} : vector<8x512xf32> to vector<8x128xf32>
    %90 = math.tanh %89 : vector<8x128xf32>
    %91 = arith.mulf %87, %67 : vector<8x128xf32>
    %92 = arith.mulf %86, %90 : vector<8x128xf32>
    %93 = arith.addf %91, %92 : vector<8x128xf32>
    %94 = math.tanh %93 : vector<8x128xf32>
    %95 = arith.mulf %88, %94 : vector<8x128xf32>
    %96 = arith.index_cast %c2_i32 : i32 to index
    %c0_38 = arith.constant 0 : index
    %c128_39 = arith.constant 128 : index
    %97 = vector.load %arg16[%96, %c0_38, %c128_39] : memref<8x8x256xf32, #tpu.memory_space<vmem>>, vector<1x8x128xf32>
    %98 = vector.shape_cast %97 : vector<1x8x128xf32> to vector<8x128xf32>
    %99 = vector.shape_cast %95 : vector<8x128xf32> to vector<1x8x128xf32>
    tpu.vector_store %arg16[%96, %c0_38, %c128_39], %99 {strides = array<i32>} : memref<8x8x256xf32, #tpu.memory_space<vmem>>, vector<1x8x128xf32>,
    %c3_i32 = arith.constant 3 : i32
    %100 = arith.index_cast %c3_i32 : i32 to index
    %c0_40 = arith.constant 0 : index
    %c0_41 = arith.constant 0 : index
    %101 = vector.load %arg15[%100, %c0_40, %c0_41] : memref<8x8x512xf32, #tpu.memory_space<vmem>>, vector<1x8x512xf32>
    %102 = vector.shape_cast %101 : vector<1x8x512xf32> to vector<8x512xf32>
    %103 = arith.truncf %95 : vector<8x128xf32> to vector<8x128xbf16>
    %cst_42 = arith.constant dense<0.000000e+00> : vector<8x512xf32>
    %104 = tpu.matmul %103, %19, %cst_42 {dimension_numbers = #tpu.dot_dimension_numbers<[1], [0], [0], [1], [0, 0, 1, 1], [], []>} : vector<8x128xbf16>, vector<128x512xbf16>, vector<8x512xf32> -> vector<8x512xf32>
    %105 = arith.addf %102, %104 : vector<8x512xf32>
    %106 = vector.extract_strided_slice %105 {offsets = [0, 0], sizes = [8, 384], strides = [1, 1]} : vector<8x512xf32> to vector<8x384xf32>
    %107 = arith.negf %106 : vector<8x384xf32>
    %108 = math.exp %107 : vector<8x384xf32>
    %cst_43 = arith.constant 1.000000e+00 : f32
    %109 = vector.broadcast %cst_43 : f32 to vector<8x384xf32>
    %110 = arith.addf %109, %108 : vector<8x384xf32>
    %111 = arith.divf %109, %110 : vector<8x384xf32>
    %112 = vector.extract_strided_slice %111 {offsets = [0, 0], sizes = [8, 128], strides = [1, 1]} : vector<8x384xf32> to vector<8x128xf32>
    %113 = vector.extract_strided_slice %111 {offsets = [0, 128], sizes = [8, 128], strides = [1, 1]} : vector<8x384xf32> to vector<8x128xf32>
    %114 = vector.extract_strided_slice %111 {offsets = [0, 256], sizes = [8, 128], strides = [1, 1]} : vector<8x384xf32> to vector<8x128xf32>
    %115 = vector.extract_strided_slice %105 {offsets = [0, 384], sizes = [8, 128], strides = [1, 1]} : vector<8x512xf32> to vector<8x128xf32>
    %116 = math.tanh %115 : vector<8x128xf32>
    %117 = arith.mulf %113, %93 : vector<8x128xf32>
    %118 = arith.mulf %112, %116 : vector<8x128xf32>
    %119 = arith.addf %117, %118 : vector<8x128xf32>
    %120 = math.tanh %119 : vector<8x128xf32>
    %121 = arith.mulf %114, %120 : vector<8x128xf32>
    %122 = arith.index_cast %c3_i32 : i32 to index
    %c0_44 = arith.constant 0 : index
    %c128_45 = arith.constant 128 : index
    %123 = vector.load %arg16[%122, %c0_44, %c128_45] : memref<8x8x256xf32, #tpu.memory_space<vmem>>, vector<1x8x128xf32>
    %124 = vector.shape_cast %123 : vector<1x8x128xf32> to vector<8x128xf32>
    %125 = vector.shape_cast %121 : vector<8x128xf32> to vector<1x8x128xf32>
    tpu.vector_store %arg16[%122, %c0_44, %c128_45], %125 {strides = array<i32>} : memref<8x8x256xf32, #tpu.memory_space<vmem>>, vector<1x8x128xf32>,
    %c4_i32 = arith.constant 4 : i32
    %126 = arith.index_cast %c4_i32 : i32 to index
    %c0_46 = arith.constant 0 : index
    %c0_47 = arith.constant 0 : index
    %127 = vector.load %arg15[%126, %c0_46, %c0_47] : memref<8x8x512xf32, #tpu.memory_space<vmem>>, vector<1x8x512xf32>
    %128 = vector.shape_cast %127 : vector<1x8x512xf32> to vector<8x512xf32>
    %129 = arith.truncf %121 : vector<8x128xf32> to vector<8x128xbf16>
    %cst_48 = arith.constant dense<0.000000e+00> : vector<8x512xf32>
    %130 = tpu.matmul %129, %19, %cst_48 {dimension_numbers = #tpu.dot_dimension_numbers<[1], [0], [0], [1], [0, 0, 1, 1], [], []>} : vector<8x128xbf16>, vector<128x512xbf16>, vector<8x512xf32> -> vector<8x512xf32>
    %131 = arith.addf %128, %130 : vector<8x512xf32>
    %132 = vector.extract_strided_slice %131 {offsets = [0, 0], sizes = [8, 384], strides = [1, 1]} : vector<8x512xf32> to vector<8x384xf32>
    %133 = arith.negf %132 : vector<8x384xf32>
    %134 = math.exp %133 : vector<8x384xf32>
    %cst_49 = arith.constant 1.000000e+00 : f32
    %135 = vector.broadcast %cst_49 : f32 to vector<8x384xf32>
    %136 = arith.addf %135, %134 : vector<8x384xf32>
    %137 = arith.divf %135, %136 : vector<8x384xf32>
    %138 = vector.extract_strided_slice %137 {offsets = [0, 0], sizes = [8, 128], strides = [1, 1]} : vector<8x384xf32> to vector<8x128xf32>
    %139 = vector.extract_strided_slice %137 {offsets = [0, 128], sizes = [8, 128], strides = [1, 1]} : vector<8x384xf32> to vector<8x128xf32>
    %140 = vector.extract_strided_slice %137 {offsets = [0, 256], sizes = [8, 128], strides = [1, 1]} : vector<8x384xf32> to vector<8x128xf32>
    %141 = vector.extract_strided_slice %131 {offsets = [0, 384], sizes = [8, 128], strides = [1, 1]} : vector<8x512xf32> to vector<8x128xf32>
    %142 = math.tanh %141 : vector<8x128xf32>
    %143 = arith.mulf %139, %119 : vector<8x128xf32>
    %144 = arith.mulf %138, %142 : vector<8x128xf32>
    %145 = arith.addf %143, %144 : vector<8x128xf32>
    %146 = math.tanh %145 : vector<8x128xf32>
    %147 = arith.mulf %140, %146 : vector<8x128xf32>
    %148 = arith.index_cast %c4_i32 : i32 to index
    %c0_50 = arith.constant 0 : index
    %c128_51 = arith.constant 128 : index
    %149 = vector.load %arg16[%148, %c0_50, %c128_51] : memref<8x8x256xf32, #tpu.memory_space<vmem>>, vector<1x8x128xf32>
    %150 = vector.shape_cast %149 : vector<1x8x128xf32> to vector<8x128xf32>
    %151 = vector.shape_cast %147 : vector<8x128xf32> to vector<1x8x128xf32>
    tpu.vector_store %arg16[%148, %c0_50, %c128_51], %151 {strides = array<i32>} : memref<8x8x256xf32, #tpu.memory_space<vmem>>, vector<1x8x128xf32>,
    %c5_i32 = arith.constant 5 : i32
    %152 = arith.index_cast %c5_i32 : i32 to index
    %c0_52 = arith.constant 0 : index
    %c0_53 = arith.constant 0 : index
    %153 = vector.load %arg15[%152, %c0_52, %c0_53] : memref<8x8x512xf32, #tpu.memory_space<vmem>>, vector<1x8x512xf32>
    %154 = vector.shape_cast %153 : vector<1x8x512xf32> to vector<8x512xf32>
    %155 = arith.truncf %147 : vector<8x128xf32> to vector<8x128xbf16>
    %cst_54 = arith.constant dense<0.000000e+00> : vector<8x512xf32>
    %156 = tpu.matmul %155, %19, %cst_54 {dimension_numbers = #tpu.dot_dimension_numbers<[1], [0], [0], [1], [0, 0, 1, 1], [], []>} : vector<8x128xbf16>, vector<128x512xbf16>, vector<8x512xf32> -> vector<8x512xf32>
    %157 = arith.addf %154, %156 : vector<8x512xf32>
    %158 = vector.extract_strided_slice %157 {offsets = [0, 0], sizes = [8, 384], strides = [1, 1]} : vector<8x512xf32> to vector<8x384xf32>
    %159 = arith.negf %158 : vector<8x384xf32>
    %160 = math.exp %159 : vector<8x384xf32>
    %cst_55 = arith.constant 1.000000e+00 : f32
    %161 = vector.broadcast %cst_55 : f32 to vector<8x384xf32>
    %162 = arith.addf %161, %160 : vector<8x384xf32>
    %163 = arith.divf %161, %162 : vector<8x384xf32>
    %164 = vector.extract_strided_slice %163 {offsets = [0, 0], sizes = [8, 128], strides = [1, 1]} : vector<8x384xf32> to vector<8x128xf32>
    %165 = vector.extract_strided_slice %163 {offsets = [0, 128], sizes = [8, 128], strides = [1, 1]} : vector<8x384xf32> to vector<8x128xf32>
    %166 = vector.extract_strided_slice %163 {offsets = [0, 256], sizes = [8, 128], strides = [1, 1]} : vector<8x384xf32> to vector<8x128xf32>
    %167 = vector.extract_strided_slice %157 {offsets = [0, 384], sizes = [8, 128], strides = [1, 1]} : vector<8x512xf32> to vector<8x128xf32>
    %168 = math.tanh %167 : vector<8x128xf32>
    %169 = arith.mulf %165, %145 : vector<8x128xf32>
    %170 = arith.mulf %164, %168 : vector<8x128xf32>
    %171 = arith.addf %169, %170 : vector<8x128xf32>
    %172 = math.tanh %171 : vector<8x128xf32>
    %173 = arith.mulf %166, %172 : vector<8x128xf32>
    %174 = arith.index_cast %c5_i32 : i32 to index
    %c0_56 = arith.constant 0 : index
    %c128_57 = arith.constant 128 : index
    %175 = vector.load %arg16[%174, %c0_56, %c128_57] : memref<8x8x256xf32, #tpu.memory_space<vmem>>, vector<1x8x128xf32>
    %176 = vector.shape_cast %175 : vector<1x8x128xf32> to vector<8x128xf32>
    %177 = vector.shape_cast %173 : vector<8x128xf32> to vector<1x8x128xf32>
    tpu.vector_store %arg16[%174, %c0_56, %c128_57], %177 {strides = array<i32>} : memref<8x8x256xf32, #tpu.memory_space<vmem>>, vector<1x8x128xf32>,
    %c6_i32 = arith.constant 6 : i32
    %178 = arith.index_cast %c6_i32 : i32 to index
    %c0_58 = arith.constant 0 : index
    %c0_59 = arith.constant 0 : index
    %179 = vector.load %arg15[%178, %c0_58, %c0_59] : memref<8x8x512xf32, #tpu.memory_space<vmem>>, vector<1x8x512xf32>
    %180 = vector.shape_cast %179 : vector<1x8x512xf32> to vector<8x512xf32>
    %181 = arith.truncf %173 : vector<8x128xf32> to vector<8x128xbf16>
    %cst_60 = arith.constant dense<0.000000e+00> : vector<8x512xf32>
    %182 = tpu.matmul %181, %19, %cst_60 {dimension_numbers = #tpu.dot_dimension_numbers<[1], [0], [0], [1], [0, 0, 1, 1], [], []>} : vector<8x128xbf16>, vector<128x512xbf16>, vector<8x512xf32> -> vector<8x512xf32>
    %183 = arith.addf %180, %182 : vector<8x512xf32>
    %184 = vector.extract_strided_slice %183 {offsets = [0, 0], sizes = [8, 384], strides = [1, 1]} : vector<8x512xf32> to vector<8x384xf32>
    %185 = arith.negf %184 : vector<8x384xf32>
    %186 = math.exp %185 : vector<8x384xf32>
    %cst_61 = arith.constant 1.000000e+00 : f32
    %187 = vector.broadcast %cst_61 : f32 to vector<8x384xf32>
    %188 = arith.addf %187, %186 : vector<8x384xf32>
    %189 = arith.divf %187, %188 : vector<8x384xf32>
    %190 = vector.extract_strided_slice %189 {offsets = [0, 0], sizes = [8, 128], strides = [1, 1]} : vector<8x384xf32> to vector<8x128xf32>
    %191 = vector.extract_strided_slice %189 {offsets = [0, 128], sizes = [8, 128], strides = [1, 1]} : vector<8x384xf32> to vector<8x128xf32>
    %192 = vector.extract_strided_slice %189 {offsets = [0, 256], sizes = [8, 128], strides = [1, 1]} : vector<8x384xf32> to vector<8x128xf32>
    %193 = vector.extract_strided_slice %183 {offsets = [0, 384], sizes = [8, 128], strides = [1, 1]} : vector<8x512xf32> to vector<8x128xf32>
    %194 = math.tanh %193 : vector<8x128xf32>
    %195 = arith.mulf %191, %171 : vector<8x128xf32>
    %196 = arith.mulf %190, %194 : vector<8x128xf32>
    %197 = arith.addf %195, %196 : vector<8x128xf32>
    %198 = math.tanh %197 : vector<8x128xf32>
    %199 = arith.mulf %192, %198 : vector<8x128xf32>
    %200 = arith.index_cast %c6_i32 : i32 to index
    %c0_62 = arith.constant 0 : index
    %c128_63 = arith.constant 128 : index
    %201 = vector.load %arg16[%200, %c0_62, %c128_63] : memref<8x8x256xf32, #tpu.memory_space<vmem>>, vector<1x8x128xf32>
    %202 = vector.shape_cast %201 : vector<1x8x128xf32> to vector<8x128xf32>
    %203 = vector.shape_cast %199 : vector<8x128xf32> to vector<1x8x128xf32>
    tpu.vector_store %arg16[%200, %c0_62, %c128_63], %203 {strides = array<i32>} : memref<8x8x256xf32, #tpu.memory_space<vmem>>, vector<1x8x128xf32>,
    %c7_i32 = arith.constant 7 : i32
    %204 = arith.index_cast %c7_i32 : i32 to index
    %c0_64 = arith.constant 0 : index
    %c0_65 = arith.constant 0 : index
    %205 = vector.load %arg15[%204, %c0_64, %c0_65] : memref<8x8x512xf32, #tpu.memory_space<vmem>>, vector<1x8x512xf32>
    %206 = vector.shape_cast %205 : vector<1x8x512xf32> to vector<8x512xf32>
    %207 = arith.truncf %199 : vector<8x128xf32> to vector<8x128xbf16>
    %cst_66 = arith.constant dense<0.000000e+00> : vector<8x512xf32>
    %208 = tpu.matmul %207, %19, %cst_66 {dimension_numbers = #tpu.dot_dimension_numbers<[1], [0], [0], [1], [0, 0, 1, 1], [], []>} : vector<8x128xbf16>, vector<128x512xbf16>, vector<8x512xf32> -> vector<8x512xf32>
    %209 = arith.addf %206, %208 : vector<8x512xf32>
    %210 = vector.extract_strided_slice %209 {offsets = [0, 0], sizes = [8, 384], strides = [1, 1]} : vector<8x512xf32> to vector<8x384xf32>
    %211 = arith.negf %210 : vector<8x384xf32>
    %212 = math.exp %211 : vector<8x384xf32>
    %cst_67 = arith.constant 1.000000e+00 : f32
    %213 = vector.broadcast %cst_67 : f32 to vector<8x384xf32>
    %214 = arith.addf %213, %212 : vector<8x384xf32>
    %215 = arith.divf %213, %214 : vector<8x384xf32>
    %216 = vector.extract_strided_slice %215 {offsets = [0, 0], sizes = [8, 128], strides = [1, 1]} : vector<8x384xf32> to vector<8x128xf32>
    %217 = vector.extract_strided_slice %215 {offsets = [0, 128], sizes = [8, 128], strides = [1, 1]} : vector<8x384xf32> to vector<8x128xf32>
    %218 = vector.extract_strided_slice %215 {offsets = [0, 256], sizes = [8, 128], strides = [1, 1]} : vector<8x384xf32> to vector<8x128xf32>
    %219 = vector.extract_strided_slice %209 {offsets = [0, 384], sizes = [8, 128], strides = [1, 1]} : vector<8x512xf32> to vector<8x128xf32>
    %220 = math.tanh %219 : vector<8x128xf32>
    %221 = arith.mulf %217, %197 : vector<8x128xf32>
    %222 = arith.mulf %216, %220 : vector<8x128xf32>
    %223 = arith.addf %221, %222 : vector<8x128xf32>
    %224 = math.tanh %223 : vector<8x128xf32>
    %225 = arith.mulf %218, %224 : vector<8x128xf32>
    %226 = arith.index_cast %c7_i32 : i32 to index
    %c0_68 = arith.constant 0 : index
    %c128_69 = arith.constant 128 : index
    %227 = vector.load %arg16[%226, %c0_68, %c128_69] : memref<8x8x256xf32, #tpu.memory_space<vmem>>, vector<1x8x128xf32>
    %228 = vector.shape_cast %227 : vector<1x8x128xf32> to vector<8x128xf32>
    %229 = vector.shape_cast %225 : vector<8x128xf32> to vector<1x8x128xf32>
    tpu.vector_store %arg16[%226, %c0_68, %c128_69], %229 {strides = array<i32>} : memref<8x8x256xf32, #tpu.memory_space<vmem>>, vector<1x8x128xf32>,
    %c8_i32 = arith.constant 8 : i32
    %c0_70 = arith.constant 0 : index
    %c0_71 = arith.constant 0 : index
    %230 = vector.load %arg13[%c0_70, %c0_71] : memref<8x128xf32, #tpu.memory_space<vmem>>, vector<8x128xf32>
    tpu.vector_store %arg13[%c0_70, %c0_71], %225 {strides = array<i32>} : memref<8x128xf32, #tpu.memory_space<vmem>>, vector<8x128xf32>,
    %c0_72 = arith.constant 0 : index
    %c0_73 = arith.constant 0 : index
    %231 = vector.load %arg14[%c0_72, %c0_73] : memref<8x128xf32, #tpu.memory_space<vmem>>, vector<8x128xf32>
    tpu.vector_store %arg14[%c0_72, %c0_73], %223 {strides = array<i32>} : memref<8x128xf32, #tpu.memory_space<vmem>>, vector<8x128xf32>,
    %c0_74 = arith.constant 0 : index
    %c0_75 = arith.constant 0 : index
    %c0_76 = arith.constant 0 : index
    %232 = vector.load %arg16[%c0_74, %c0_75, %c0_76] : memref<8x8x256xf32, #tpu.memory_space<vmem>>, vector<8x8x256xf32>
    %233 = vector.shape_cast %232 : vector<8x8x256xf32> to vector<64x256xf32>
    %234 = arith.truncf %233 : vector<64x256xf32> to vector<64x256xbf16>
    %c0_77 = arith.constant 0 : index
    %c0_78 = arith.constant 0 : index
    %235 = vector.load %arg8[%c0_77, %c0_78] : memref<256x128xbf16, #tpu.memory_space<vmem>>, vector<256x128xbf16>
    %cst_79 = arith.constant dense<0.000000e+00> : vector<64x128xf32>
    %236 = tpu.matmul %234, %235, %cst_79 {dimension_numbers = #tpu.dot_dimension_numbers<[1], [0], [0], [1], [0, 0, 1, 1], [], []>} : vector<64x256xbf16>, vector<256x128xbf16>, vector<64x128xf32> -> vector<64x128xf32>
    %c0_80 = arith.constant 0 : index
    %c0_81 = arith.constant 0 : index
    %237 = vector.load %arg9[%c0_80, %c0_81] : memref<1x128xf32, #tpu.memory_space<vmem>>, vector<1x128xf32>
    %238 = vector.broadcast %237 : vector<1x128xf32> to vector<64x128xf32>
    %239 = arith.addf %236, %238 : vector<64x128xf32>
    %cst_82 = arith.constant 0.000000e+00 : f32
    %240 = vector.broadcast %cst_82 : f32 to vector<64x128xf32>
    %241 = arith.maximumf %239, %240 : vector<64x128xf32>
    %242 = arith.truncf %241 : vector<64x128xf32> to vector<64x128xbf16>
    %c0_83 = arith.constant 0 : index
    %c0_84 = arith.constant 0 : index
    %243 = vector.load %arg10[%c0_83, %c0_84] : memref<128x1xbf16, #tpu.memory_space<vmem>>, vector<128x1xbf16>
    %cst_85 = arith.constant dense<0.000000e+00> : vector<64x1xf32>
    %244 = tpu.matmul %242, %243, %cst_85 {dimension_numbers = #tpu.dot_dimension_numbers<[1], [0], [0], [1], [0, 0, 1, 1], [], []>} : vector<64x128xbf16>, vector<128x1xbf16>, vector<64x1xf32> -> vector<64x1xf32>
    %c0_86 = arith.constant 0 : index
    %c0_87 = arith.constant 0 : index
    %245 = vector.load %arg11[%c0_86, %c0_87] : memref<1x1xf32, #tpu.memory_space<vmem>>, vector<1x1xf32>
    %246 = vector.broadcast %245 : vector<1x1xf32> to vector<64x1xf32>
    %247 = arith.addf %244, %246 : vector<64x1xf32>
    %c0_88 = arith.constant 0 : index
    %c0_89 = arith.constant 0 : index
    %248 = vector.load %arg12[%c0_88, %c0_89] : memref<64x1xf32, #tpu.memory_space<vmem>>, vector<64x1xf32>
    tpu.vector_store %arg12[%c0_88, %c0_89], %247 {strides = array<i32>} : memref<64x1xf32, #tpu.memory_space<vmem>>, vector<64x1xf32>,
    return
  }
}

</mosaic_0001>

<bundles_post_ra>
// kernel: q_network_lstm_forward.1
= control target key start
LH: loop header
LB: loop body
LE: loop exit
PB: predicated region body
PF: predicated region fallthrough
CT: control target
= control target key end

     0   :  { %v3833_v1 = vmov 0   ;;  %vm146_vm0 = vcmask 1044480   ;;  %vm133_vm1 = vcmask 474112   ;;  %v65_v48 = vlaneseq  ;;  %s3818_s3 = inlined_call_operand.vmem [shape: bf16[58,256], index: 3, kind: input, shape index: {}]   ;;  %s3819_s0 = inlined_call_operand.vmem [shape: bf16[64,58], index: 0, kind: input, shape index: {}]   ;;  %s3820_s5 = inlined_call_operand.vmem [shape: bf16[128,512], index: 5, kind: input, shape index: {}]   ;;  %s3821_s6 = inlined_call_operand.vmem [shape: bf16[128,512], index: 6, kind: input, shape index: {}]   ;;  %s3822_s4 = inlined_call_operand.vmem [shape: f32[1,256], index: 4, kind: input, shape index: {}]   ;;  %s3823_s1 = inlined_call_operand.vmem [shape: f32[8,128], index: 1, kind: input, shape index: {}]   ;;  %s3824_s7 = inlined_call_operand.vmem [shape: f32[1,512], index: 7, kind: input, shape index: {}]   ;;  %s3825_s2 = inlined_call_operand.vmem [shape: f32[8,128], index: 2, kind: input, shape index: {}]   ;;  %s3826_s8 = inlined_call_operand.vmem [shape: bf16[256,128], index: 8, kind: input, shape index: {}]   ;;  %s3827_s10 = inlined_call_operand.vmem [shape: bf16[128,1], index: 10, kind: input, shape index: {}]   ;;  %s3828_s9 = inlined_call_operand.vmem [shape: f32[1,128], index: 9, kind: input, shape index: {}]   ;;  %s3829_s14 = inlined_call_operand.vmem [shape: f32[8,128], index: 14, kind: output, shape index: {2}]   ;;  %s3830_s13 = inlined_call_operand.vmem [shape: f32[8,128], index: 13, kind: output, shape index: {1}]   ;;  %s3831_s11 = inlined_call_operand.<no memory space> [shape: f32[1,1], index: 11, kind: input, shape index: {}]   ;;  %s3832_s12 = inlined_call_operand.vmem [shape: f32[64,1], index: 12, kind: output, shape index: {0}]  }
   0x1   :  { %v2393_v0 = vld [vmem:[%s3818_s3 + $0x4] ss:$8 sps:$4 sm:$0xff]   ;;  %185 = vmatprep.mubr.bf16.mxu0 %v3833_v1  ;;  %492 = vmatprep.mubr.bf16.mxu1 %v3833_v1  ;;  %v2395_v2 = vld [vmem:[%s3818_s3] ss:$8 sps:$4 sm:$0xff]   ;;  %v2396_v3 = vld [vmem:[%s3818_s3 + $0x14] ss:$8 sps:$4 sm:$0xff]  }
   0x2   :  { %153 = vmatprep.subr.bf16.mxu0 %v2393_v0  ;;  %v2398_v4 = vld [vmem:[%s3818_s3 + $0x10] ss:$8 sps:$4 sm:$0xff]   ;;  %v2399_v5 = vld [vmem:[%s3818_s3 + $0x24] ss:$8 sps:$4 sm:$0xff]   ;;  %v2401_v8 = vld [vmem:[%s3818_s3 + $0x20] ss:$8 sps:$4 sm:$0xff]  }
   0x3   :  { %154 = vmatpush1.bf16.msra.mxu0 %v2395_v2  ;;  %v2402_v6 = vld [vmem:[%s3818_s3 + $0x34] ss:$8 sps:$4 sm:$0x1f]   ;;  %v2404_v7 = vld [vmem:[%s3818_s3 + $0x30] ss:$8 sps:$4 sm:$0x1f]  }
   0x4   :  { %155 = vmatprep.subr.bf16.mxu0 %v2396_v3  ;;  %v2409_v9 = vld [vmem:[%s3820_s5 + $0x4] ss:$16 sps:$4 sm:$0xff]   ;;  %v2411_v10 = vld [vmem:[%s3820_s5] ss:$16 sps:$4 sm:$0xff]   ;;  %v2414_v11 = vld [vmem:[%s3820_s5 + $0xc] ss:$16 sps:$4 sm:$0xff]  }
   0x5   :  { %v148_v12 = vsel %vm146_vm0, %v2404_v7, 0  ;;  %460 = vmatprep.subr.bf16.mxu1 %v2409_v9  ;;  %v2415_v13 = vld [vmem:[%s3820_s5 + $0x24] ss:$16 sps:$4 sm:$0xff]   ;;  %v2417_v14 = vld [vmem:[%s3820_s5 + $0x20] ss:$16 sps:$4 sm:$0xff]   ;;  %v2406_v24 = vld [vmem:[%s3819_s0 + $0x8] sm:$0xff]  }
   0x6   :  { %461 = vmatpush1.bf16.msra.mxu1 %v2411_v10  ;;  %v2405_v15 = vld [vmem:[%s3819_s0] sm:$0xff]   ;;  %v2412_v16 = vld [vmem:[%s3820_s5 + $0x8] ss:$16 sps:$4 sm:$0xff]   ;;  %v2420_v18 = vld [vmem:[%s3820_s5 + $0x2c] ss:$16 sps:$4 sm:$0xff]   ;;  %v2919_v49 = vshrl.u32 %v65_v48, 7 }
   0x7   :  { %156 = vmatpush1.bf16.msra.mxu0 %v2398_v4  ;;  %462 = vmatprep.subr.bf16.mxu1 %v2415_v13  ;;  %v2421_v17 = vld [vmem:[%s3820_s5 + $0x44] ss:$16 sps:$4 sm:$0xff]   ;;  %v2423_v19 = vld [vmem:[%s3820_s5 + $0x40] ss:$16 sps:$4 sm:$0xff]   ;;  %v2418_v21 = vld [vmem:[%s3820_s5 + $0x28] ss:$16 sps:$4 sm:$0xff]  }
   0x8   :  { %157 = vmatprep.subr.bf16.mxu0 %v2399_v5  ;;  %v2427_v20 = vld [vmem:[%s3820_s5 + $0x64] ss:$16 sps:$4 sm:$0xff]   ;;  %v2426_v22 = vld [vmem:[%s3820_s5 + $0x4c] ss:$16 sps:$4 sm:$0xff]   ;;  %v2429_v23 = vld [vmem:[%s3820_s5 + $0x60] ss:$16 sps:$4 sm:$0xff]  }
   0x9   :  { %v2433_v25 = vld [vmem:[%s3820_s5 + $0x84] ss:$16 sps:$4 sm:$0xff]   ;;  %v2424_v26 = vld [vmem:[%s3820_s5 + $0x48] ss:$16 sps:$4 sm:$0xff]   ;;  %v2432_v27 = vld [vmem:[%s3820_s5 + $0x6c] ss:$16 sps:$4 sm:$0xff]  }
   0xa   :  { %463 = vmatpush1.bf16.msra.mxu1 %v2417_v14  ;;  %v2430_v28 = vld [vmem:[%s3820_s5 + $0x68] ss:$16 sps:$4 sm:$0xff]   ;;  %v2435_v29 = vld [vmem:[%s3820_s5 + $0x80] ss:$16 sps:$4 sm:$0xff]   ;;  %v2439_v30 = vld [vmem:[%s3820_s5 + $0xa4] ss:$16 sps:$4 sm:$0xff]  }
   0xb   :  { %158 = vmatpush1.bf16.msra.mxu0 %v2401_v8  ;;  %464 = vmatprep.subr.bf16.mxu1 %v2421_v17  ;;  %v2438_v31 = vld [vmem:[%s3820_s5 + $0x8c] ss:$16 sps:$4 sm:$0xff]   ;;  %v2441_v32 = vld [vmem:[%s3820_s5 + $0xa0] ss:$16 sps:$4 sm:$0xff]   ;;  %v2436_v34 = vld [vmem:[%s3820_s5 + $0x88] ss:$16 sps:$4 sm:$0xff]  }
   0xc   :  { %2197 = vmatprep.subr.msk.bf16.mxu0 %vm146_vm0, %v2402_v6  ;;  %v2407_v33 = vld [vmem:[%s3819_s0 + $0x10] sm:$0xff]   ;;  %v2444_v35 = vld [vmem:[%s3820_s5 + $0xac] ss:$16 sps:$4 sm:$0xff]   ;;  %v2442_v36 = vld [vmem:[%s3820_s5 + $0xa8] ss:$16 sps:$4 sm:$0xff]   ;;  %v67_v50 = vsub.s32 0, %v2919_v49 }
   0xd   :  { %v2408_v37 = vld [vmem:[%s3819_s0 + $0x18] sm:$0xff]   ;;  %v2445_v38 = vld [vmem:[%s3820_s5 + $0xc4] ss:$16 sps:$4 sm:$0xff]   ;;  %v2447_v40 = vld [vmem:[%s3820_s5 + $0xc0] ss:$16 sps:$4 sm:$0xff]   ;;  %v71_v52 = vsub.s32 1, %v2919_v49 }
   0xe   :  { %465 = vmatpush1.bf16.msra.mxu1 %v2423_v19  ;;  %v2450_v39 = vld [vmem:[%s3820_s5 + $0xcc] ss:$16 sps:$4 sm:$0xff]   ;;  %v2448_v41 = vld [vmem:[%s3820_s5 + $0xc8] ss:$16 sps:$4 sm:$0xff]   ;;  %v2451_v42 = vld [vmem:[%s3820_s5 + $0xe4] ss:$16 sps:$4 sm:$0xff]  }
   0xf   :  { %160 = vmatpush1.bf16.msra.mxu0 %v148_v12  ;;  %466 = vmatprep.subr.bf16.mxu1 %v2427_v20  ;;  %v2456_v43 = vld [vmem:[%s3820_s5 + $0xec] ss:$16 sps:$4 sm:$0xff]   ;;  %v2453_v44 = vld [vmem:[%s3820_s5 + $0xe0] ss:$16 sps:$4 sm:$0xff]   ;;  %v2454_v45 = vld [vmem:[%s3820_s5 + $0xe8] ss:$16 sps:$4 sm:$0xff]  }
  0x10   :  { %533 = vmatprep.subr.bf16.mxu0 %v2414_v11  ;;  %v2910_v46 = vld [vmem:[%s3821_s6 + $0x4] ss:$16 sps:$4 sm:$0xff]   ;;  %v2916_v47 = vld [vmem:[%s3821_s6 + $0xc] ss:$16 sps:$4 sm:$0xff]   ;;  %v63_v51 = vld [vmem:[%s3822_s4] sm:$0x3] }
  0x11   :  { %v2928_v53 = vrot.slane %v63_v51, %v67_v50  ;;  %v2932_v54 = vrot.slane %v63_v51, %v71_v52  ;;  %v2943_v5 = vld [vmem:[%s3821_s6] ss:$16 sps:$4 sm:$0xff]   ;;  %v2948_v6 = vld [vmem:[%s3821_s6 + $0x8] ss:$16 sps:$4 sm:$0xff]   ;;  %v2953_v9 = vld [vmem:[%s3821_s6 + $0x24] ss:$16 sps:$4 sm:$0xff]  }
  0x12   :  { %2198 = vmatmul.mubr.msk.bf16.vlgmr.msra.gmra.mrb[0].mxu0 %vm133_vm1, %v2405_v15  ;;  %467 = vmatpush1.bf16.msra.mxu1 %v2429_v23  ;;  %v2958_v10 = vld [vmem:[%s3821_s6 + $0x2c] ss:$16 sps:$4 sm:$0xff]   ;;  %v2968_v17 = vld [vmem:[%s3821_s6 + $0x20] ss:$16 sps:$4 sm:$0xff]   ;;  %v2981_v20 = vld [vmem:[%s3821_s6 + $0x44] ss:$16 sps:$4 sm:$0xff]  }
  0x13   :  { %195 = vmatprep.mubr.bf16.mxu0 %v3833_v1  ;;  %534 = vmatpush1.bf16.msra.mxu0 %v2412_v16  ;;  %vm2164_vm2 = vcmask 7168  }
  0x14   :  { %535 = vmatprep.subr.bf16.mxu0 %v2420_v18  ;;  %468 = vmatprep.subr.bf16.mxu1 %v2433_v25  ;;  %v2973_v18 = vld [vmem:[%s3821_s6 + $0x28] ss:$16 sps:$4 sm:$0xff]  }
  0x16   :  { %469 = vmatpush1.bf16.msra.mxu1 %v2435_v29 }
  0x17   :  { %536 = vmatpush1.bf16.msra.mxu0 %v2418_v21  ;;  %470 = vmatprep.subr.bf16.mxu1 %v2439_v30  ;;  %v2986_v21 = vld [vmem:[%s3821_s6 + $0x4c] ss:$16 sps:$4 sm:$0xff]  }
  0x18   :  { %537 = vmatprep.subr.bf16.mxu0 %v2426_v22 }
  0x1a   :  { %2199 = vmatmul.mubr.msk.bf16.gmra.mrb[4].mxu0 %vm133_vm1, %v2406_v24  ;;  %471 = vmatpush1.bf16.msra.mxu1 %v2441_v32  ;;  %v3014_v32 = vld [vmem:[%s3821_s6 + $0x6c] ss:$16 sps:$4 sm:$0xff]  }
  0x1b   :  { %205 = vmatprep.mubr.bf16.mxu0 %v3833_v1  ;;  %538 = vmatpush1.bf16.msra.mxu0 %v2424_v26 }
  0x1c   :  { %539 = vmatprep.subr.bf16.mxu0 %v2432_v27  ;;  %472 = vmatprep.subr.bf16.mxu1 %v2445_v38  ;;  %v2997_v27 = vld [vmem:[%s3821_s6 + $0x40] ss:$16 sps:$4 sm:$0xff]  }
  0x1e   :  { %473 = vmatpush1.bf16.msra.mxu1 %v2447_v40  ;;  %v3029_v40 = vld [vmem:[%s3821_s6 + $0x68] ss:$16 sps:$4 sm:$0xff]  }
  0x1f   :  { %540 = vmatpush1.bf16.msra.mxu0 %v2430_v28  ;;  %474 = vmatprep.subr.bf16.mxu1 %v2451_v42  ;;  %v3002_v28 = vld [vmem:[%s3821_s6 + $0x48] ss:$16 sps:$4 sm:$0xff]   ;;  %v3037_v42 = vld [vmem:[%s3821_s6 + $0x84] ss:$16 sps:$4 sm:$0xff]  }
  0x20   :  { %541 = vmatprep.subr.bf16.mxu0 %v2438_v31  ;;  %v3009_v31 = vld [vmem:[%s3821_s6 + $0x64] ss:$16 sps:$4 sm:$0xff]  }
  0x22   :  { %2200 = vmatmul.mubr.msk.bf16.gmra.mrb[8].mxu0 %vm133_vm1, %v2407_v33  ;;  %475 = vmatpush1.bf16.msra.mxu1 %v2453_v44 }
  0x23   :  { %215 = vmatprep.mubr.bf16.mxu0 %v3833_v1  ;;  %542 = vmatpush1.bf16.msra.mxu0 %v2436_v34 }
  0x24   :  { %543 = vmatprep.subr.bf16.mxu0 %v2444_v35  ;;  %853 = vmatprep.subr.bf16.mxu1 %v2910_v46 }
  0x27   :  { %544 = vmatpush1.bf16.msra.mxu0 %v2442_v36 }
  0x28   :  { %545 = vmatprep.subr.bf16.mxu0 %v2450_v39  ;;  %v3024_v39 = vld [vmem:[%s3821_s6 + $0x60] ss:$16 sps:$4 sm:$0xff]  }
  0x2a   :  { %2201 = vmatmul.mubr.msk.bf16.gmra.mrb[12].mxu0 %vm133_vm1, %v2408_v37 }
  0x2b   :  { %565 = vmatprep.mubr.bf16.mxu0 %v3833_v1  ;;  %546 = vmatpush1.bf16.msra.mxu0 %v2448_v41 }
  0x2c   :  { %547 = vmatprep.subr.bf16.mxu0 %v2456_v43  ;;  %v3042_v43 = vld [vmem:[%s3821_s6 + $0x8c] ss:$16 sps:$4 sm:$0xff]  }
  0x2f   :  { %548 = vmatpush1.bf16.msra.mxu0 %v2454_v45 }
  0x30   :  { %894 = vmatprep.subr.bf16.mxu0 %v2916_v47 }
  0xe5   :  { %v187_v55 = vpop.f32.mrb[0].mxu0 }
  0xe6   :  { %v188_v56 = vadd.f32 %v187_v55, %v2928_v53  ;;  %v189_v57 = vpop.f32.mrb[1].mxu0 }
  0xe7   :  { %v190_v58 = vadd.f32 %v189_v57, %v2932_v54  ;;  %v191_v59 = vpop.f32.mrb[2].mxu0  ;;  %v3058_v57 = vld [vmem:[%s3821_s6 + $0x88] ss:$16 sps:$4 sm:$0xff]  }
  0xe8   :  { %v192_v60 = vadd.f32 %v191_v59, %v2928_v53  ;;  %v193_v61 = vpop.f32.mrb[3].mxu0  ;;  %v226_v63 = vmax.f32 %v188_v56, 0.0  ;;  %v3053_v56 = vld [vmem:[%s3821_s6 + $0x80] ss:$16 sps:$4 sm:$0xff]  }
  0xe9   :  { %v194_v62 = vadd.f32 %v193_v61, %v2932_v54  ;;  %v227_v2 = vmax.f32 %v190_v58, 0.0  ;;  %v3070_v61 = vld [vmem:[%s3821_s6 + $0xac] ss:$16 sps:$4 sm:$0xff]  }
  0xea   :  { %v228_v0 = vmax.f32 %v192_v60, 0.0  ;;  %v3065_v60 = vld [vmem:[%s3821_s6 + $0xa4] ss:$16 sps:$4 sm:$0xff]  }
  0xeb   :  { %v229_v3 = vmax.f32 %v194_v62, 0.0 }
  0xec   :  { %v2938_v4 = vpack.c.bf16 %v228_v0, %v226_v63 }
  0xed   :  { %v242_v7 = vpack.c.bf16 %v229_v3, %v227_v2  ;;  %v197_v8 = vpop.f32.mrb[4].mxu0 }
  0xee   :  { %3835 = vst [vmem:[#allocation5_spill] sm:$0xff] %v2938_v4  ;;  %v198_v11 = vadd.f32 %v197_v8, %v2928_v53  ;;  %v199_v12 = vpop.f32.mrb[5].mxu0  ;;  %v3080_v8 = vld [vmem:[%s3821_s6 + $0xa0] ss:$16 sps:$4 sm:$0xff]  }
  0xef   :  { %v200_v13 = vadd.f32 %v199_v12, %v2932_v54  ;;  %v201_v14 = vpop.f32.mrb[6].mxu0  ;;  %493 = vmatmul.mubr.bf16.vlgmr.msra.gmra.mrb[0].mxu1 %v242_v7  ;;  %566 = vmatmul.mubr.bf16.vlgmr.msra.gmra.mrb[16].mxu0 %v242_v7 }
  0xf0   :  { %v202_v15 = vadd.f32 %v201_v14, %v2928_v53  ;;  %854 = vmatpush1.bf16.msra.mxu1 %v2943_v5  ;;  %v203_v16 = vpop.f32.mrb[7].mxu0  ;;  %895 = vmatpush1.bf16.msra.mxu0 %v2948_v6  ;;  %v230_v22 = vmax.f32 %v198_v11, 0.0  ;;  %v3085_v11 = vld [vmem:[%s3821_s6 + $0xa8] ss:$16 sps:$4 sm:$0xff]  }
  0xf1   :  { %v204_v19 = vadd.f32 %v203_v16, %v2932_v54  ;;  %855 = vmatprep.subr.bf16.mxu1 %v2953_v9  ;;  %896 = vmatprep.subr.bf16.mxu0 %v2958_v10  ;;  %v231_v24 = vmax.f32 %v200_v13, 0.0  ;;  %v3098_v13 = vld [vmem:[%s3821_s6 + $0xcc] ss:$16 sps:$4 sm:$0xff]  }
  0xf2   :  { %v232_v23 = vmax.f32 %v202_v15, 0.0  ;;  %502 = vmatprep.mubr.bf16.mxu1 %v3833_v1  ;;  %575 = vmatprep.mubr.bf16.mxu0 %v3833_v1 }
  0xf3   :  { %v233_v25 = vmax.f32 %v204_v19, 0.0 }
  0xf4   :  { %v2990_v26 = vpack.c.bf16 %v232_v23, %v230_v22  ;;  %856 = vmatpush1.bf16.msra.mxu1 %v2968_v17  ;;  %897 = vmatpush1.bf16.msra.mxu0 %v2973_v18  ;;  %v3109_v22 = vld [vmem:[%s3821_s6 + $0xc0] ss:$16 sps:$4 sm:$0xff]   ;;  %v3114_v23 = vld [vmem:[%s3821_s6 + $0xc8] ss:$16 sps:$4 sm:$0xff]  }
  0xf5   :  { %v243_v29 = vpack.c.bf16 %v233_v25, %v231_v24  ;;  %v207_v30 = vpop.f32.mrb[8].mxu0  ;;  %857 = vmatprep.subr.bf16.mxu1 %v2981_v20  ;;  %898 = vmatprep.subr.bf16.mxu0 %v2986_v21  ;;  %v3121_v25 = vld [vmem:[%s3821_s6 + $0xe4] ss:$16 sps:$4 sm:$0xff]  }
  0xf6   :  { %3836 = vst [vmem:[#allocation6_spill] sm:$0xff] %v2990_v26  ;;  %v208_v33 = vadd.f32 %v207_v30, %v2928_v53  ;;  %v209_v34 = vpop.f32.mrb[9].mxu0  ;;  %v3133_v30 = vld [vmem:[%s3821_s6 + $0xe0] ss:$16 sps:$4 sm:$0xff]  }
  0xf7   :  { %v210_v35 = vadd.f32 %v209_v34, %v2932_v54  ;;  %v211_v36 = vpop.f32.mrb[10].mxu0  ;;  %503 = vmatmul.mubr.bf16.gmra.mrb[4].mxu1 %v243_v29  ;;  %576 = vmatmul.mubr.bf16.gmra.mrb[20].mxu0 %v243_v29  ;;  %v3126_v29 = vld [vmem:[%s3821_s6 + $0xec] ss:$16 sps:$4 sm:$0xff]   ;;  %v686_v34 = vld [vmem:[%s3823_s1] sm:$0xff] }
  0xf8   :  { %v212_v37 = vadd.f32 %v211_v36, %v2928_v53  ;;  %858 = vmatpush1.bf16.msra.mxu1 %v2997_v27  ;;  %v213_v38 = vpop.f32.mrb[11].mxu0  ;;  %899 = vmatpush1.bf16.msra.mxu0 %v3002_v28  ;;  %v234_v44 = vmax.f32 %v208_v33, 0.0  ;;  %v3138_v33 = vld [vmem:[%s3821_s6 + $0xe8] ss:$16 sps:$4 sm:$0xff]   ;;  %v290_v36 = vsub.s32 2, %v2919_v49 }
  0xf9   :  { %v214_v41 = vadd.f32 %v213_v38, %v2932_v54  ;;  %859 = vmatprep.subr.bf16.mxu1 %v3009_v31  ;;  %900 = vmatprep.subr.bf16.mxu0 %v3014_v32  ;;  %v235_v48 = vmax.f32 %v210_v35, 0.0  ;;  %v692_v35 = vpack.c.bf16 %v686_v34, %v686_v34  ;;  %v294_v38 = vsub.s32 3, %v2919_v49 }
  0xfa   :  { %v236_v45 = vmax.f32 %v212_v37, 0.0  ;;  %512 = vmatprep.mubr.bf16.mxu1 %v3833_v1  ;;  %585 = vmatprep.mubr.bf16.mxu0 %v3833_v1  ;;  %v278_v37 = vld [vmem:[%s3824_s7] sm:$0xf] }
  0xfb   :  { %v237_v51 = vmax.f32 %v214_v41, 0.0 }
  0xfc   :  { %v3046_v55 = vpack.c.bf16 %v236_v45, %v234_v44  ;;  %860 = vmatpush1.bf16.msra.mxu1 %v3024_v39  ;;  %901 = vmatpush1.bf16.msra.mxu0 %v3029_v40  ;;  %v283_v45 = vrot.slane %v278_v37, %v67_v50 }
  0xfd   :  { %v244_v58 = vpack.c.bf16 %v237_v51, %v235_v48  ;;  %v217_v59 = vpop.f32.mrb[12].mxu0  ;;  %861 = vmatprep.subr.bf16.mxu1 %v3037_v42  ;;  %902 = vmatprep.subr.bf16.mxu0 %v3042_v43  ;;  %v291_v48 = vrot.slane %v278_v37, %v290_v36 }
  0xfe   :  { %3837 = vst [vmem:[#allocation7_spill] sm:$0xff] %v3046_v55  ;;  %v218_v62 = vadd.f32 %v217_v59, %v2928_v53  ;;  %v219_v63 = vpop.f32.mrb[13].mxu0  ;;  %v287_v59 = vrot.slane %v278_v37, %v71_v52 }
  0xff   :  { %v220_v0 = vadd.f32 %v219_v63, %v2932_v54  ;;  %v221_v2 = vpop.f32.mrb[14].mxu0  ;;  %513 = vmatmul.mubr.bf16.gmra.mrb[8].mxu1 %v244_v58  ;;  %586 = vmatmul.mubr.bf16.gmra.mrb[24].mxu0 %v244_v58 }
 0x100   :  { %v222_v3 = vadd.f32 %v221_v2, %v2928_v53  ;;  %862 = vmatpush1.bf16.msra.mxu1 %v3053_v56  ;;  %v223_v7 = vpop.f32.mrb[15].mxu0  ;;  %903 = vmatpush1.bf16.msra.mxu0 %v3058_v57  ;;  %v3093_v53 = vld [vmem:[%s3821_s6 + $0xc4] ss:$16 sps:$4 sm:$0xff]   ;;  %v238_v14 = vmax.f32 %v218_v62, 0.0  ;;  %v295_v62 = vrot.slane %v278_v37, %v294_v38 }
 0x101   :  { %v224_v12 = vadd.f32 %v223_v7, %v2932_v54  ;;  %863 = vmatprep.subr.bf16.mxu1 %v3065_v60  ;;  %904 = vmatprep.subr.bf16.mxu0 %v3070_v61  ;;  %v239_v54 = vmax.f32 %v220_v0, 0.0 }
 0x102   :  { %v240_v15 = vmax.f32 %v222_v3, 0.0  ;;  %522 = vmatprep.mubr.bf16.mxu1 %v3833_v1  ;;  %595 = vmatprep.mubr.bf16.mxu0 %v3833_v1 }
 0x103   :  { %v241_v16 = vmax.f32 %v224_v12, 0.0 }
 0x104   :  { %v3102_v19 = vpack.c.bf16 %v240_v15, %v238_v14  ;;  %864 = vmatpush1.bf16.msra.mxu1 %v3080_v8  ;;  %905 = vmatpush1.bf16.msra.mxu0 %v3085_v11 }
 0x105   :  { %v245_v24 = vpack.c.bf16 %v241_v16, %v239_v54  ;;  %865 = vmatprep.subr.bf16.mxu1 %v3093_v53  ;;  %906 = vmatprep.subr.bf16.mxu0 %v3098_v13 }
 0x106   :  { %3838 = vst [vmem:[#allocation8_spill] sm:$0xff] %v3102_v19 }
 0x107   :  { %523 = vmatmul.mubr.bf16.gmra.mrb[12].mxu1 %v245_v24  ;;  %596 = vmatmul.mubr.bf16.gmra.mrb[28].mxu0 %v245_v24 }
 0x108   :  { %866 = vmatpush1.bf16.msra.mxu1 %v3109_v22  ;;  %907 = vmatpush1.bf16.msra.mxu0 %v3114_v23 }
 0x109   :  { %867 = vmatprep.subr.bf16.mxu1 %v3121_v25  ;;  %908 = vmatprep.subr.bf16.mxu0 %v3126_v29 }
 0x10a   :  { %885 = vmatprep.mubr.bf16.mxu1 %v3833_v1  ;;  %926 = vmatprep.mubr.bf16.mxu0 %v3833_v1 }
 0x10c   :  { %868 = vmatpush1.bf16.msra.mxu1 %v3133_v30  ;;  %909 = vmatpush1.bf16.msra.mxu0 %v3138_v33 }
 0x10d   :  { %970 = vmatprep.subr.bf16.mxu1 %v2910_v46  ;;  %1011 = vmatprep.subr.bf16.mxu0 %v2916_v47 }
 0x10f   :  { %886 = vmatmul.mubr.bf16.vlgmr.msra.gmra.mrb[16].mxu1 %v692_v35  ;;  %927 = vmatmul.mubr.bf16.vlgmr.msra.gmra.mrb[32].mxu0 %v692_v35 }
 0x110   :  { %971 = vmatpush1.bf16.msra.mxu1 %v2943_v5  ;;  %1012 = vmatpush1.bf16.msra.mxu0 %v2948_v6 }
 0x111   :  { %972 = vmatprep.subr.bf16.mxu1 %v2953_v9  ;;  %1013 = vmatprep.subr.bf16.mxu0 %v2958_v10 }
 0x112   :  { %1002 = vmatprep.mubr.bf16.mxu1 %v3833_v1  ;;  %1043 = vmatprep.mubr.bf16.mxu0 %v3833_v1 }
 0x114   :  { %973 = vmatpush1.bf16.msra.mxu1 %v2968_v17  ;;  %1014 = vmatpush1.bf16.msra.mxu0 %v2973_v18 }
 0x115   :  { %974 = vmatprep.subr.bf16.mxu1 %v2981_v20  ;;  %1015 = vmatprep.subr.bf16.mxu0 %v2986_v21 }
 0x118   :  { %975 = vmatpush1.bf16.msra.mxu1 %v2997_v27  ;;  %1016 = vmatpush1.bf16.msra.mxu0 %v3002_v28 }
 0x119   :  { %976 = vmatprep.subr.bf16.mxu1 %v3009_v31  ;;  %1017 = vmatprep.subr.bf16.mxu0 %v3014_v32 }
 0x11c   :  { %977 = vmatpush1.bf16.msra.mxu1 %v3024_v39  ;;  %1018 = vmatpush1.bf16.msra.mxu0 %v3029_v40 }
 0x11d   :  { %978 = vmatprep.subr.bf16.mxu1 %v3037_v42  ;;  %1019 = vmatprep.subr.bf16.mxu0 %v3042_v43 }
 0x120   :  { %979 = vmatpush1.bf16.msra.mxu1 %v3053_v56  ;;  %1020 = vmatpush1.bf16.msra.mxu0 %v3058_v57 }
 0x121   :  { %980 = vmatprep.subr.bf16.mxu1 %v3065_v60  ;;  %1021 = vmatprep.subr.bf16.mxu0 %v3070_v61 }
 0x124   :  { %981 = vmatpush1.bf16.msra.mxu1 %v3080_v8  ;;  %1022 = vmatpush1.bf16.msra.mxu0 %v3085_v11 }
 0x125   :  { %982 = vmatprep.subr.bf16.mxu1 %v3093_v53  ;;  %1023 = vmatprep.subr.bf16.mxu0 %v3098_v13 }
 0x128   :  { %983 = vmatpush1.bf16.msra.mxu1 %v3109_v22  ;;  %1024 = vmatpush1.bf16.msra.mxu0 %v3114_v23 }
 0x129   :  { %984 = vmatprep.subr.bf16.mxu1 %v3121_v25  ;;  %1025 = vmatprep.subr.bf16.mxu0 %v3126_v29 }
 0x12c   :  { %985 = vmatpush1.bf16.msra.mxu1 %v3133_v30  ;;  %1026 = vmatpush1.bf16.msra.mxu0 %v3138_v33 }
 0x12d   :  { %1088 = vmatprep.subr.bf16.mxu1 %v2910_v46  ;;  %1129 = vmatprep.subr.bf16.mxu0 %v2916_v47 }
 0x1c2   :  { %v3190_v41 = vpop.f32.mrb[0].mxu1  ;;  %v3192_v44 = vpop.f32.mrb[16].mxu0 }
 0x1c3   :  { %v496_v51 = vpop.f32.mrb[1].mxu1  ;;  %v569_v58 = vpop.f32.mrb[17].mxu0 }
 0x1c4   :  { %v498_v63 = vpop.f32.mrb[2].mxu1  ;;  %v571_v0 = vpop.f32.mrb[18].mxu0 }
 0x1c5   :  { %v3198_v2 = vadd.f32 %v498_v63, %v283_v45  ;;  %v3200_v3 = vadd.f32 %v571_v0, %v291_v48  ;;  %v500_v7 = vpop.f32.mrb[3].mxu1  ;;  %v573_v12 = vpop.f32.mrb[19].mxu0 }
 0x1c6   :  { %v3202_v14 = vadd.f32 %v500_v7, %v287_v59  ;;  %v3204_v15 = vadd.f32 %v573_v12, %v295_v62 }
 0x1ca   :  { %v504_v50 = vpop.f32.mrb[4].mxu1  ;;  %v577_v54 = vpop.f32.mrb[20].mxu0 }
 0x1cb   :  { %v3206_v16 = vadd.f32 %v504_v50, %v283_v45  ;;  %v3208_v24 = vadd.f32 %v577_v54, %v291_v48  ;;  %v506_v49 = vpop.f32.mrb[5].mxu1  ;;  %v579_v52 = vpop.f32.mrb[21].mxu0 }
 0x1cc   :  { %v3210_v34 = vadd.f32 %v506_v49, %v287_v59  ;;  %v3212_v35 = vadd.f32 %v579_v52, %v295_v62  ;;  %v508_v36 = vpop.f32.mrb[6].mxu1  ;;  %v581_v37 = vpop.f32.mrb[22].mxu0 }
 0x1cd   :  { %v3214_v38 = vadd.f32 %v508_v36, %v283_v45  ;;  %v3216_v63 = vadd.f32 %v581_v37, %v291_v48  ;;  %v510_v0 = vpop.f32.mrb[7].mxu1  ;;  %v583_v7 = vpop.f32.mrb[23].mxu0 }
 0x1ce   :  { %3839 = vst [vmem:[#allocation9_spill] sm:$0xff] %v3210_v34  ;;  %3840 = vst [vmem:[#allocation10_spill] sm:$0xff] %v3212_v35  ;;  %v3218_v12 = vadd.f32 %v510_v0, %v287_v59  ;;  %v3220_v50 = vadd.f32 %v583_v7, %v295_v62 }
 0x1cf   :  { %3841 = vst [vmem:[#allocation11_spill] sm:$0xff] %v3214_v38  ;;  %3842 = vst [vmem:[#allocation12_spill] sm:$0xff] %v3216_v63 }
 0x1d0   :  { %3843 = vst [vmem:[#allocation13_spill] sm:$0xff] %v3218_v12  ;;  %3844 = vst [vmem:[#allocation14_spill] sm:$0xff] %v3220_v50 }
 0x1d2   :  { %v514_v54 = vpop.f32.mrb[8].mxu1  ;;  %v587_v1 = vpop.f32.mrb[24].mxu0 }
 0x1d3   :  { %v3222_v19 = vadd.f32 %v514_v54, %v283_v45  ;;  %v3224_v49 = vadd.f32 %v587_v1, %v291_v48  ;;  %v516_v52 = vpop.f32.mrb[9].mxu1  ;;  %v589_v55 = vpop.f32.mrb[25].mxu0 }
 0x1d4   :  { %v3226_v26 = vadd.f32 %v516_v52, %v287_v59  ;;  %v3228_v36 = vadd.f32 %v589_v55, %v295_v62  ;;  %v518_v37 = vpop.f32.mrb[10].mxu1  ;;  %v591_v4 = vpop.f32.mrb[26].mxu0 }
 0x1d5   :  { %3845 = vst [vmem:[#allocation15_spill] sm:$0xff] %v3222_v19  ;;  %3846 = vst [vmem:[#allocation16_spill] sm:$0xff] %v3224_v49  ;;  %v3230_v63 = vadd.f32 %v518_v37, %v283_v45  ;;  %v3232_v0 = vadd.f32 %v591_v4, %v291_v48  ;;  %v520_v7 = vpop.f32.mrb[11].mxu1  ;;  %v593_v50 = vpop.f32.mrb[27].mxu0 }
 0x1d6   :  { %3847 = vst [vmem:[#allocation17_spill] sm:$0xff] %v3226_v26  ;;  %3848 = vst [vmem:[#allocation18_spill] sm:$0xff] %v3228_v36  ;;  %v3234_v12 = vadd.f32 %v520_v7, %v287_v59  ;;  %v3236_v54 = vadd.f32 %v593_v50, %v295_v62 }
 0x1d7   :  { %3849 = vst [vmem:[#allocation19_spill] sm:$0xff] %v3230_v63  ;;  %3850 = vst [vmem:[#allocation20_spill] sm:$0xff] %v3232_v0 }
 0x1d8   :  { %3851 = vst [vmem:[#allocation21_spill] sm:$0xff] %v3234_v12  ;;  %3852 = vst [vmem:[#allocation22_spill] sm:$0xff] %v3236_v54 }
 0x1da   :  { %v524_v1 = vpop.f32.mrb[12].mxu1  ;;  %v597_v49 = vpop.f32.mrb[28].mxu0 }
 0x1db   :  { %v3238_v19 = vadd.f32 %v524_v1, %v283_v45  ;;  %v3240_v52 = vadd.f32 %v597_v49, %v291_v48  ;;  %v526_v55 = vpop.f32.mrb[13].mxu1  ;;  %v599_v36 = vpop.f32.mrb[29].mxu0  ;;  %v495_v49 = vadd.f32 %v3190_v41, %v283_v45 }
 0x1dc   :  { %v3242_v26 = vadd.f32 %v526_v55, %v287_v59  ;;  %v3244_v37 = vadd.f32 %v599_v36, %v295_v62  ;;  %v528_v4 = vpop.f32.mrb[14].mxu1  ;;  %v601_v0 = vpop.f32.mrb[30].mxu0  ;;  %v497_v55 = vadd.f32 %v496_v51, %v287_v59 }
 0x1dd   :  { %3853 = vst [vmem:[#allocation23_spill] sm:$0xff] %v3238_v19  ;;  %3854 = vst [vmem:[#allocation24_spill] sm:$0xff] %v3240_v52  ;;  %v3246_v63 = vadd.f32 %v528_v4, %v283_v45  ;;  %v3248_v7 = vadd.f32 %v601_v0, %v291_v48  ;;  %v530_v50 = vpop.f32.mrb[15].mxu1  ;;  %v603_v54 = vpop.f32.mrb[31].mxu0  ;;  %v568_v52 = vadd.f32 %v3192_v44, %v291_v48 }
 0x1de   :  { %3855 = vst [vmem:[#allocation25_spill] sm:$0xff] %v3242_v26  ;;  %3856 = vst [vmem:[#allocation26_spill] sm:$0xff] %v3244_v37  ;;  %v3250_v12 = vadd.f32 %v530_v50, %v287_v59  ;;  %v3252_v1 = vadd.f32 %v603_v54, %v295_v62  ;;  %v570_v26 = vadd.f32 %v569_v58, %v295_v62 }
 0x1df   :  { %3857 = vst [vmem:[#allocation27_spill] sm:$0xff] %v3246_v63  ;;  %3858 = vst [vmem:[#allocation28_spill] sm:$0xff] %v3248_v7 }
 0x1e0   :  { %3859 = vst [vmem:[#allocation29_spill] sm:$0xff] %v3250_v12  ;;  %3860 = vst [vmem:[#allocation30_spill] sm:$0xff] %v3252_v1 }
 0x1e2   :  { %v887_v36 = vpop.f32.mrb[16].mxu1  ;;  %v928_v37 = vpop.f32.mrb[32].mxu0 }
 0x1e3   :  { %v935_v19 = vadd.f32 %v887_v36, %v495_v49  ;;  %v937_v38 = vadd.f32 %v928_v37, %v568_v52  ;;  %v889_v4 = vpop.f32.mrb[17].mxu1  ;;  %v930_v63 = vpop.f32.mrb[33].mxu0 }
 0x1e4   :  { %v936_v0 = vadd.f32 %v889_v4, %v497_v55  ;;  %v938_v7 = vadd.f32 %v930_v63, %v570_v26  ;;  %v891_v35 = vpop.f32.mrb[18].mxu1  ;;  %v932_v34 = vpop.f32.mrb[34].mxu0 }
 0x1e5   :  { %v2266_v50 = vmul.f32 -1.442695, %v935_v19  ;;  %v892_v12 = vpop.f32.mrb[19].mxu1  ;;  %v933_v54 = vpop.f32.mrb[35].mxu0  ;;  %v2268_v41 = vmul.f32 -1.442695, %v937_v38 }
 0x1e6   :  { %v2267_v1 = vmul.f32 -1.442695, %v936_v0  ;;  %v687_v19 = vld [vmem:[%s3825_s2] sm:$0xff] }
 0x1e7   :  { %2529 = vpow2.f32 %v2266_v50 }
 0x1e8   :  { %2531 = vpow2.f32 %v2267_v1  ;;  %v3861_v1 = vmov 0  }
 0x1e9   :  { %2533 = vtanh.f32 %v938_v7 }
 0x1ea   :  { %2535 = vpow2.f32 %v2268_v41 }
 0x1f1   :  { %v2530_v44 = vpop.eup %2529 }
 0x1f2   :  { %v948_v45 = vadd.f32 1.0, %v2530_v44  ;;  %v2532_v48 = vpop.eup %2531 }
 0x1f3   :  { %v949_v51 = vadd.f32 1.0, %v2532_v48  ;;  %v2534_v58 = vpop.eup %2533 }
 0x1f4   :  { %2537 = vrcp.f32 %v948_v45  ;;  %v2536_v59 = vpop.eup %2535 }
 0x1f5   :  { %2539 = vrcp.f32 %v949_v51  ;;  %v950_v35 = vadd.f32 1.0, %v2536_v59 }
 0x1f7   :  { %2541 = vrcp.f32 %v950_v35 }
 0x1fe   :  { %v2538_v26 = vpop.eup %2537 }
 0x1ff   :  { %v959_v62 = vmul.f32 %v2538_v26, %v2534_v58  ;;  %v2540_v34 = vpop.eup %2539 }
 0x200   :  { %v958_v63 = vmul.f32 %v2540_v34, %v687_v19 }
 0x201   :  { %v2542_v12 = vpop.eup %2541 }
 0x202   :  { %v3259_v38 = vadd.f32 %v959_v62, %v958_v63 }
 0x204   :  { %2543 = vtanh.f32 %v3259_v38 }
 0x20e   :  { %v2544_v52 = vpop.eup %2543 }
 0x20f   :  { %v3262_v37 = vmul.f32 %v2544_v52, %v2542_v12 }
 0x211   :  { %v969_v7 = vpack.c.bf16 %v3262_v37, %v3262_v37 }
 0x213   :  { %1003 = vmatmul.mubr.bf16.vlgmr.msra.gmra.mrb[20].mxu1 %v969_v7  ;;  %1044 = vmatmul.mubr.bf16.vlgmr.msra.gmra.mrb[36].mxu0 %v969_v7 }
 0x214   :  { %1089 = vmatpush1.bf16.msra.mxu1 %v2943_v5  ;;  %1130 = vmatpush1.bf16.msra.mxu0 %v2948_v6 }
 0x215   :  { %1090 = vmatprep.subr.bf16.mxu1 %v2953_v9  ;;  %1131 = vmatprep.subr.bf16.mxu0 %v2958_v10 }
 0x216   :  { %1120 = vmatprep.mubr.bf16.mxu1 %v3861_v1  ;;  %1161 = vmatprep.mubr.bf16.mxu0 %v3861_v1 }
 0x218   :  { %1091 = vmatpush1.bf16.msra.mxu1 %v2968_v17  ;;  %1132 = vmatpush1.bf16.msra.mxu0 %v2973_v18 }
 0x219   :  { %1092 = vmatprep.subr.bf16.mxu1 %v2981_v20  ;;  %1133 = vmatprep.subr.bf16.mxu0 %v2986_v21 }
 0x21c   :  { %1093 = vmatpush1.bf16.msra.mxu1 %v2997_v27  ;;  %1134 = vmatpush1.bf16.msra.mxu0 %v3002_v28 }
 0x21d   :  { %1094 = vmatprep.subr.bf16.mxu1 %v3009_v31  ;;  %1135 = vmatprep.subr.bf16.mxu0 %v3014_v32 }
 0x220   :  { %1095 = vmatpush1.bf16.msra.mxu1 %v3024_v39  ;;  %1136 = vmatpush1.bf16.msra.mxu0 %v3029_v40 }
 0x221   :  { %1096 = vmatprep.subr.bf16.mxu1 %v3037_v42  ;;  %1137 = vmatprep.subr.bf16.mxu0 %v3042_v43 }
 0x224   :  { %1097 = vmatpush1.bf16.msra.mxu1 %v3053_v56  ;;  %1138 = vmatpush1.bf16.msra.mxu0 %v3058_v57 }
 0x225   :  { %1098 = vmatprep.subr.bf16.mxu1 %v3065_v60  ;;  %1139 = vmatprep.subr.bf16.mxu0 %v3070_v61 }
 0x228   :  { %1099 = vmatpush1.bf16.msra.mxu1 %v3080_v8  ;;  %1140 = vmatpush1.bf16.msra.mxu0 %v3085_v11 }
 0x229   :  { %1100 = vmatprep.subr.bf16.mxu1 %v3093_v53  ;;  %1141 = vmatprep.subr.bf16.mxu0 %v3098_v13 }
 0x22c   :  { %1101 = vmatpush1.bf16.msra.mxu1 %v3109_v22  ;;  %1142 = vmatpush1.bf16.msra.mxu0 %v3114_v23 }
 0x22d   :  { %1102 = vmatprep.subr.bf16.mxu1 %v3121_v25  ;;  %1143 = vmatprep.subr.bf16.mxu0 %v3126_v29 }
 0x230   :  { %1103 = vmatpush1.bf16.msra.mxu1 %v3133_v30  ;;  %1144 = vmatpush1.bf16.msra.mxu0 %v3138_v33 }
 0x231   :  { %1206 = vmatprep.subr.bf16.mxu1 %v2910_v46  ;;  %1247 = vmatprep.subr.bf16.mxu0 %v2916_v47 }
 0x2e6   :  { %v1004_v49 = vpop.f32.mrb[20].mxu1  ;;  %v1045_v55 = vpop.f32.mrb[36].mxu0 }
 0x2e7   :  { %v1052_v36 = vadd.f32 %v1004_v49, %v3198_v2  ;;  %v1054_v4 = vadd.f32 %v1045_v55, %v3200_v3  ;;  %v1006_v0 = vpop.f32.mrb[21].mxu1  ;;  %v1047_v50 = vpop.f32.mrb[37].mxu0 }
 0x2e8   :  { %v1053_v54 = vadd.f32 %v1006_v0, %v3202_v14  ;;  %v1055_v41 = vadd.f32 %v1047_v50, %v3204_v15  ;;  %v1008_v44 = vpop.f32.mrb[22].mxu1  ;;  %v1049_v45 = vpop.f32.mrb[38].mxu0 }
 0x2e9   :  { %v2269_v48 = vmul.f32 -1.442695, %v1052_v36  ;;  %v1009_v51 = vpop.f32.mrb[23].mxu1  ;;  %v1050_v58 = vpop.f32.mrb[39].mxu0  ;;  %v2271_v26 = vmul.f32 -1.442695, %v1054_v4 }
 0x2ea   :  { %v2270_v59 = vmul.f32 -1.442695, %v1053_v54  ;;  %v3862_v45 = vld [vmem:[#allocation9_spill] sm:$0xff]  ;;  %v3863_v51 = vld [vmem:[#allocation10_spill] sm:$0xff] }
 0x2eb   :  { %2545 = vpow2.f32 %v2269_v48 }
 0x2ec   :  { %2547 = vpow2.f32 %v2270_v59 }
 0x2ed   :  { %2549 = vtanh.f32 %v1055_v41 }
 0x2ee   :  { %2551 = vpow2.f32 %v2271_v26 }
 0x2f5   :  { %v2546_v19 = vpop.eup %2545 }
 0x2f6   :  { %v1065_v62 = vadd.f32 1.0, %v2546_v19  ;;  %v2548_v2 = vpop.eup %2547 }
 0x2f7   :  { %v1066_v3 = vadd.f32 1.0, %v2548_v2  ;;  %v2550_v14 = vpop.eup %2549 }
 0x2f8   :  { %2553 = vrcp.f32 %v1065_v62  ;;  %v2552_v34 = vpop.eup %2551 }
 0x2f9   :  { %2555 = vrcp.f32 %v1066_v3  ;;  %v1067_v12 = vadd.f32 1.0, %v2552_v34 }
 0x2fb   :  { %2557 = vrcp.f32 %v1067_v12 }
 0x302   :  { %v2554_v15 = vpop.eup %2553 }
 0x303   :  { %v1076_v35 = vmul.f32 %v2554_v15, %v2550_v14  ;;  %v2556_v63 = vpop.eup %2555 }
 0x304   :  { %v1075_v52 = vmul.f32 %v2556_v63, %v3259_v38 }
 0x305   :  { %v2558_v49 = vpop.eup %2557 }
 0x306   :  { %v3305_v7 = vadd.f32 %v1076_v35, %v1075_v52 }
 0x308   :  { %2559 = vtanh.f32 %v3305_v7 }
 0x312   :  { %v2560_v55 = vpop.eup %2559 }
 0x313   :  { %v3308_v36 = vmul.f32 %v2560_v55, %v2558_v49 }
 0x315   :  { %v1087_v4 = vpack.c.bf16 %v3308_v36, %v3308_v36 }
 0x317   :  { %1121 = vmatmul.mubr.bf16.vlgmr.msra.gmra.mrb[24].mxu1 %v1087_v4  ;;  %1162 = vmatmul.mubr.bf16.vlgmr.msra.gmra.mrb[40].mxu0 %v1087_v4 }
 0x318   :  { %1207 = vmatpush1.bf16.msra.mxu1 %v2943_v5  ;;  %1248 = vmatpush1.bf16.msra.mxu0 %v2948_v6 }
 0x319   :  { %1208 = vmatprep.subr.bf16.mxu1 %v2953_v9  ;;  %1249 = vmatprep.subr.bf16.mxu0 %v2958_v10 }
 0x31a   :  { %1238 = vmatprep.mubr.bf16.mxu1 %v3861_v1  ;;  %1279 = vmatprep.mubr.bf16.mxu0 %v3861_v1 }
 0x31c   :  { %1209 = vmatpush1.bf16.msra.mxu1 %v2968_v17  ;;  %1250 = vmatpush1.bf16.msra.mxu0 %v2973_v18 }
 0x31d   :  { %1210 = vmatprep.subr.bf16.mxu1 %v2981_v20  ;;  %1251 = vmatprep.subr.bf16.mxu0 %v2986_v21 }
 0x320   :  { %1211 = vmatpush1.bf16.msra.mxu1 %v2997_v27  ;;  %1252 = vmatpush1.bf16.msra.mxu0 %v3002_v28 }
 0x321   :  { %1212 = vmatprep.subr.bf16.mxu1 %v3009_v31  ;;  %1253 = vmatprep.subr.bf16.mxu0 %v3014_v32 }
 0x324   :  { %1213 = vmatpush1.bf16.msra.mxu1 %v3024_v39  ;;  %1254 = vmatpush1.bf16.msra.mxu0 %v3029_v40 }
 0x325   :  { %1214 = vmatprep.subr.bf16.mxu1 %v3037_v42  ;;  %1255 = vmatprep.subr.bf16.mxu0 %v3042_v43 }
 0x328   :  { %1215 = vmatpush1.bf16.msra.mxu1 %v3053_v56  ;;  %1256 = vmatpush1.bf16.msra.mxu0 %v3058_v57 }
 0x329   :  { %1216 = vmatprep.subr.bf16.mxu1 %v3065_v60  ;;  %1257 = vmatprep.subr.bf16.mxu0 %v3070_v61 }
 0x32c   :  { %1217 = vmatpush1.bf16.msra.mxu1 %v3080_v8  ;;  %1258 = vmatpush1.bf16.msra.mxu0 %v3085_v11 }
 0x32d   :  { %1218 = vmatprep.subr.bf16.mxu1 %v3093_v53  ;;  %1259 = vmatprep.subr.bf16.mxu0 %v3098_v13 }
 0x330   :  { %1219 = vmatpush1.bf16.msra.mxu1 %v3109_v22  ;;  %1260 = vmatpush1.bf16.msra.mxu0 %v3114_v23 }
 0x331   :  { %1220 = vmatprep.subr.bf16.mxu1 %v3121_v25  ;;  %1261 = vmatprep.subr.bf16.mxu0 %v3126_v29 }
 0x334   :  { %1221 = vmatpush1.bf16.msra.mxu1 %v3133_v30  ;;  %1262 = vmatpush1.bf16.msra.mxu0 %v3138_v33 }
 0x335   :  { %1324 = vmatprep.subr.bf16.mxu1 %v2910_v46  ;;  %1365 = vmatprep.subr.bf16.mxu0 %v2916_v47 }
 0x3ea   :  { %v1122_v38 = vpop.f32.mrb[24].mxu1  ;;  %v1163_v0 = vpop.f32.mrb[40].mxu0 }
 0x3eb   :  { %v1170_v50 = vadd.f32 %v1122_v38, %v3206_v16  ;;  %v1172_v54 = vadd.f32 %v1163_v0, %v3208_v24  ;;  %v1124_v41 = vpop.f32.mrb[25].mxu1  ;;  %v1165_v44 = vpop.f32.mrb[41].mxu0 }
 0x3ec   :  { %v1171_v48 = vadd.f32 %v1124_v41, %v3862_v45  ;;  %v1173_v58 = vadd.f32 %v1165_v44, %v3863_v51  ;;  %v1126_v59 = vpop.f32.mrb[26].mxu1  ;;  %v1167_v26 = vpop.f32.mrb[42].mxu0  ;;  %v3864_v45 = vld [vmem:[#allocation11_spill] sm:$0xff]  ;;  %v3865_v51 = vld [vmem:[#allocation12_spill] sm:$0xff] }
 0x3ed   :  { %v2272_v19 = vmul.f32 -1.442695, %v1170_v50  ;;  %v1127_v62 = vpop.f32.mrb[27].mxu1  ;;  %v1168_v2 = vpop.f32.mrb[43].mxu0  ;;  %v2274_v3 = vmul.f32 -1.442695, %v1172_v54 }
 0x3ee   :  { %v2273_v46 = vmul.f32 -1.442695, %v1171_v48  ;;  %v3867_v2 = vld [vmem:[#allocation14_spill] sm:$0xff] }
 0x3ef   :  { %2561 = vpow2.f32 %v2272_v19  ;;  %v3866_v19 = vld [vmem:[#allocation13_spill] sm:$0xff] }
 0x3f0   :  { %2563 = vpow2.f32 %v2273_v46 }
 0x3f1   :  { %2565 = vtanh.f32 %v1173_v58 }
 0x3f2   :  { %2567 = vpow2.f32 %v2274_v3 }
 0x3f9   :  { %v2562_v14 = vpop.eup %2561 }
 0x3fa   :  { %v1183_v34 = vadd.f32 1.0, %v2562_v14  ;;  %v2564_v16 = vpop.eup %2563 }
 0x3fb   :  { %v1184_v24 = vadd.f32 1.0, %v2564_v16  ;;  %v2566_v15 = vpop.eup %2565 }
 0x3fc   :  { %2569 = vrcp.f32 %v1183_v34  ;;  %v2568_v35 = vpop.eup %2567 }
 0x3fd   :  { %2571 = vrcp.f32 %v1184_v24  ;;  %v1185_v49 = vadd.f32 1.0, %v2568_v35 }
 0x3ff   :  { %2573 = vrcp.f32 %v1185_v49 }
 0x406   :  { %v2570_v63 = vpop.eup %2569 }
 0x407   :  { %v1194_v12 = vmul.f32 %v2570_v63, %v2566_v15  ;;  %v2572_v52 = vpop.eup %2571 }
 0x408   :  { %v1193_v55 = vmul.f32 %v2572_v52, %v3305_v7  ;;  %v3393_v7 = vld [vmem:[%s3821_s6 + $0x4] ss:$16 sps:$4 sm:$0xff]  }
 0x409   :  { %v2574_v38 = vpop.eup %2573 }
 0x40a   :  { %v3351_v4 = vadd.f32 %v1194_v12, %v1193_v55 }
 0x40c   :  { %2575 = vtanh.f32 %v3351_v4 }
 0x416   :  { %v2576_v0 = vpop.eup %2575 }
 0x417   :  { %v3354_v50 = vmul.f32 %v2576_v0, %v2574_v38 }
 0x419   :  { %v1205_v54 = vpack.c.bf16 %v3354_v50, %v3354_v50 }
 0x41b   :  { %1239 = vmatmul.mubr.bf16.vlgmr.msra.gmra.mrb[28].mxu1 %v1205_v54  ;;  %1280 = vmatmul.mubr.bf16.vlgmr.msra.gmra.mrb[44].mxu0 %v1205_v54 }
 0x41c   :  { %1325 = vmatpush1.bf16.msra.mxu1 %v2943_v5  ;;  %1366 = vmatpush1.bf16.msra.mxu0 %v2948_v6 }
 0x41d   :  { %1326 = vmatprep.subr.bf16.mxu1 %v2953_v9  ;;  %1367 = vmatprep.subr.bf16.mxu0 %v2958_v10 }
 0x41e   :  { %1356 = vmatprep.mubr.bf16.mxu1 %v3861_v1  ;;  %1397 = vmatprep.mubr.bf16.mxu0 %v3861_v1 }
 0x420   :  { %1327 = vmatpush1.bf16.msra.mxu1 %v2968_v17  ;;  %1368 = vmatpush1.bf16.msra.mxu0 %v2973_v18 }
 0x421   :  { %1328 = vmatprep.subr.bf16.mxu1 %v2981_v20  ;;  %1369 = vmatprep.subr.bf16.mxu0 %v2986_v21 }
 0x424   :  { %1329 = vmatpush1.bf16.msra.mxu1 %v2997_v27  ;;  %1370 = vmatpush1.bf16.msra.mxu0 %v3002_v28 }
 0x425   :  { %1330 = vmatprep.subr.bf16.mxu1 %v3009_v31  ;;  %1371 = vmatprep.subr.bf16.mxu0 %v3014_v32 }
 0x428   :  { %1331 = vmatpush1.bf16.msra.mxu1 %v3024_v39  ;;  %1372 = vmatpush1.bf16.msra.mxu0 %v3029_v40 }
 0x429   :  { %1332 = vmatprep.subr.bf16.mxu1 %v3037_v42  ;;  %1373 = vmatprep.subr.bf16.mxu0 %v3042_v43 }
 0x42c   :  { %1333 = vmatpush1.bf16.msra.mxu1 %v3053_v56  ;;  %1374 = vmatpush1.bf16.msra.mxu0 %v3058_v57 }
 0x42d   :  { %1334 = vmatprep.subr.bf16.mxu1 %v3065_v60  ;;  %1375 = vmatprep.subr.bf16.mxu0 %v3070_v61 }
 0x430   :  { %1335 = vmatpush1.bf16.msra.mxu1 %v3080_v8  ;;  %1376 = vmatpush1.bf16.msra.mxu0 %v3085_v11 }
 0x431   :  { %1336 = vmatprep.subr.bf16.mxu1 %v3093_v53  ;;  %1377 = vmatprep.subr.bf16.mxu0 %v3098_v13 }
 0x434   :  { %1337 = vmatpush1.bf16.msra.mxu1 %v3109_v22  ;;  %1378 = vmatpush1.bf16.msra.mxu0 %v3114_v23 }
 0x435   :  { %1338 = vmatprep.subr.bf16.mxu1 %v3121_v25  ;;  %1379 = vmatprep.subr.bf16.mxu0 %v3126_v29 }
 0x438   :  { %1339 = vmatpush1.bf16.msra.mxu1 %v3133_v30  ;;  %1380 = vmatpush1.bf16.msra.mxu0 %v3138_v33 }
 0x439   :  { %1442 = vmatprep.subr.bf16.mxu1 %v3393_v7  ;;  %1483 = vmatprep.subr.bf16.mxu0 %v2916_v47 }
 0x4ee   :  { %v1240_v41 = vpop.f32.mrb[28].mxu1  ;;  %v1281_v44 = vpop.f32.mrb[44].mxu0 }
 0x4ef   :  { %v1288_v48 = vadd.f32 %v1240_v41, %v3864_v45  ;;  %v1290_v58 = vadd.f32 %v1281_v44, %v3865_v51  ;;  %v1242_v59 = vpop.f32.mrb[29].mxu1  ;;  %v1283_v26 = vpop.f32.mrb[45].mxu0 }
 0x4f0   :  { %v1289_v62 = vadd.f32 %v1242_v59, %v3866_v19  ;;  %v1291_v46 = vadd.f32 %v1283_v26, %v3867_v2  ;;  %v1244_v3 = vpop.f32.mrb[30].mxu1  ;;  %v1285_v14 = vpop.f32.mrb[46].mxu0 }
 0x4f1   :  { %v2275_v34 = vmul.f32 -1.442695, %v1288_v48  ;;  %v1245_v16 = vpop.f32.mrb[31].mxu1  ;;  %v1286_v24 = vpop.f32.mrb[47].mxu0  ;;  %v2277_v47 = vmul.f32 -1.442695, %v1290_v58 }
 0x4f2   :  { %v2276_v15 = vmul.f32 -1.442695, %v1289_v62 }
 0x4f3   :  { %2577 = vpow2.f32 %v2275_v34 }
 0x4f4   :  { %2579 = vpow2.f32 %v2276_v15 }
 0x4f5   :  { %2581 = vtanh.f32 %v1291_v46 }
 0x4f6   :  { %2583 = vpow2.f32 %v2277_v47 }
 0x4fd   :  { %v2578_v35 = vpop.eup %2577 }
 0x4fe   :  { %v1301_v63 = vadd.f32 1.0, %v2578_v35  ;;  %v2580_v12 = vpop.eup %2579 }
 0x4ff   :  { %v1302_v52 = vadd.f32 1.0, %v2580_v12  ;;  %v2582_v49 = vpop.eup %2581  ;;  %v3469_v12 = vld [vmem:[%s3821_s6 + $0x8] ss:$16 sps:$4 sm:$0xff]  }
 0x500   :  { %2585 = vrcp.f32 %v1301_v63  ;;  %v2584_v55 = vpop.eup %2583  ;;  %v3463_v63 = vld [vmem:[%s3821_s6] ss:$16 sps:$4 sm:$0xff]  }
 0x501   :  { %2587 = vrcp.f32 %v1302_v52  ;;  %v1303_v41 = vadd.f32 1.0, %v2584_v55  ;;  %v3475_v52 = vld [vmem:[%s3821_s6 + $0x24] ss:$16 sps:$4 sm:$0xff]   ;;  %v3489_v55 = vld [vmem:[%s3821_s6 + $0x20] ss:$16 sps:$4 sm:$0xff]  }
 0x503   :  { %2589 = vrcp.f32 %v1303_v41  ;;  %v3513_v41 = vld [vmem:[%s3821_s6 + $0x40] ss:$16 sps:$4 sm:$0xff]  }
 0x50a   :  { %v2586_v38 = vpop.eup %2585 }
 0x50b   :  { %v1312_v0 = vmul.f32 %v2586_v38, %v2582_v49  ;;  %v2588_v54 = vpop.eup %2587  ;;  %v3481_v49 = vld [vmem:[%s3821_s6 + $0x2c] ss:$16 sps:$4 sm:$0xff]   ;;  %v3495_v38 = vld [vmem:[%s3821_s6 + $0x28] ss:$16 sps:$4 sm:$0xff]  }
 0x50c   :  { %v1311_v44 = vmul.f32 %v2588_v54, %v3351_v4  ;;  %v3507_v54 = vld [vmem:[%s3821_s6 + $0x4c] ss:$16 sps:$4 sm:$0xff]  }
 0x50d   :  { %v2590_v48 = vpop.eup %2589 }
 0x50e   :  { %v3402_v45 = vadd.f32 %v1312_v0, %v1311_v44  ;;  %v3501_v0 = vld [vmem:[%s3821_s6 + $0x44] ss:$16 sps:$4 sm:$0xff]   ;;  %v3519_v44 = vld [vmem:[%s3821_s6 + $0x48] ss:$16 sps:$4 sm:$0xff]  }
 0x510   :  { %2591 = vtanh.f32 %v3402_v45 }
 0x51a   :  { %v2592_v51 = vpop.eup %2591 }
 0x51b   :  { %v3405_v58 = vmul.f32 %v2592_v51, %v2590_v48  ;;  %v3531_v48 = vld [vmem:[%s3821_s6 + $0x6c] ss:$16 sps:$4 sm:$0xff]   ;;  %v3537_v51 = vld [vmem:[%s3821_s6 + $0x60] ss:$16 sps:$4 sm:$0xff]  }
 0x51d   :  { %v1323_v59 = vpack.c.bf16 %v3405_v58, %v3405_v58 }
 0x51f   :  { %1357 = vmatmul.mubr.bf16.vlgmr.msra.gmra.mrb[32].mxu1 %v1323_v59  ;;  %1398 = vmatmul.mubr.bf16.vlgmr.msra.gmra.mrb[48].mxu0 %v1323_v59  ;;  %v3543_v59 = vld [vmem:[%s3821_s6 + $0x68] ss:$16 sps:$4 sm:$0xff]  }
 0x520   :  { %1443 = vmatpush1.bf16.msra.mxu1 %v2943_v5  ;;  %1484 = vmatpush1.bf16.msra.mxu0 %v2948_v6  ;;  %v3445_v5 = vld [vmem:[%s3821_s6 + $0xc] ss:$16 sps:$4 sm:$0xff]  }
 0x521   :  { %1444 = vmatprep.subr.bf16.mxu1 %v2953_v9  ;;  %1485 = vmatprep.subr.bf16.mxu0 %v2958_v10  ;;  %v3868_v10 = vld [vmem:[#allocation15_spill] sm:$0xff] }
 0x522   :  { %1474 = vmatprep.mubr.bf16.mxu1 %v3861_v1  ;;  %1515 = vmatprep.mubr.bf16.mxu0 %v3861_v1 }
 0x524   :  { %1445 = vmatpush1.bf16.msra.mxu1 %v2968_v17  ;;  %1486 = vmatpush1.bf16.msra.mxu0 %v2973_v18  ;;  %v3869_v18 = vld [vmem:[#allocation16_spill] sm:$0xff] }
 0x525   :  { %1446 = vmatprep.subr.bf16.mxu1 %v2981_v20  ;;  %1487 = vmatprep.subr.bf16.mxu0 %v2986_v21 }
 0x528   :  { %1447 = vmatpush1.bf16.msra.mxu1 %v2997_v27  ;;  %1488 = vmatpush1.bf16.msra.mxu0 %v3002_v28  ;;  %v3870_v28 = vld [vmem:[#allocation17_spill] sm:$0xff] }
 0x529   :  { %1448 = vmatprep.subr.bf16.mxu1 %v3009_v31  ;;  %1489 = vmatprep.subr.bf16.mxu0 %v3014_v32  ;;  %v3871_v32 = vld [vmem:[#allocation18_spill] sm:$0xff] }
 0x52c   :  { %1449 = vmatpush1.bf16.msra.mxu1 %v3024_v39  ;;  %1490 = vmatpush1.bf16.msra.mxu0 %v3029_v40 }
 0x52d   :  { %1450 = vmatprep.subr.bf16.mxu1 %v3037_v42  ;;  %1491 = vmatprep.subr.bf16.mxu0 %v3042_v43 }
 0x530   :  { %1451 = vmatpush1.bf16.msra.mxu1 %v3053_v56  ;;  %1492 = vmatpush1.bf16.msra.mxu0 %v3058_v57 }
 0x531   :  { %1452 = vmatprep.subr.bf16.mxu1 %v3065_v60  ;;  %1493 = vmatprep.subr.bf16.mxu0 %v3070_v61 }
 0x534   :  { %1453 = vmatpush1.bf16.msra.mxu1 %v3080_v8  ;;  %1494 = vmatpush1.bf16.msra.mxu0 %v3085_v11 }
 0x535   :  { %1454 = vmatprep.subr.bf16.mxu1 %v3093_v53  ;;  %1495 = vmatprep.subr.bf16.mxu0 %v3098_v13 }
 0x538   :  { %1455 = vmatpush1.bf16.msra.mxu1 %v3109_v22  ;;  %1496 = vmatpush1.bf16.msra.mxu0 %v3114_v23 }
 0x539   :  { %1456 = vmatprep.subr.bf16.mxu1 %v3121_v25  ;;  %1497 = vmatprep.subr.bf16.mxu0 %v3126_v29 }
 0x53c   :  { %1457 = vmatpush1.bf16.msra.mxu1 %v3133_v30  ;;  %1498 = vmatpush1.bf16.msra.mxu0 %v3138_v33 }
 0x53d   :  { %1560 = vmatprep.subr.bf16.mxu1 %v3393_v7  ;;  %1601 = vmatprep.subr.bf16.mxu0 %v3445_v5 }
 0x5f2   :  { %v1358_v6 = vpop.f32.mrb[32].mxu1  ;;  %v1399_v9 = vpop.f32.mrb[48].mxu0 }
 0x5f3   :  { %v1406_v17 = vadd.f32 %v1358_v6, %v3868_v10  ;;  %v1408_v20 = vadd.f32 %v1399_v9, %v3869_v18  ;;  %v1360_v21 = vpop.f32.mrb[33].mxu1  ;;  %v1401_v27 = vpop.f32.mrb[49].mxu0  ;;  %v3549_v6 = vld [vmem:[%s3821_s6 + $0x84] ss:$16 sps:$4 sm:$0xff]   ;;  %v3555_v9 = vld [vmem:[%s3821_s6 + $0x8c] ss:$16 sps:$4 sm:$0xff]  }
 0x5f4   :  { %v1407_v31 = vadd.f32 %v1360_v21, %v3870_v28  ;;  %v1409_v39 = vadd.f32 %v1401_v27, %v3871_v32  ;;  %v1362_v40 = vpop.f32.mrb[34].mxu1  ;;  %v1403_v42 = vpop.f32.mrb[50].mxu0  ;;  %v3561_v10 = vld [vmem:[%s3821_s6 + $0x80] ss:$16 sps:$4 sm:$0xff]   ;;  %v3573_v18 = vld [vmem:[%s3821_s6 + $0xa4] ss:$16 sps:$4 sm:$0xff]  }
 0x5f5   :  { %v2278_v43 = vmul.f32 -1.442695, %v1406_v17  ;;  %v1363_v56 = vpop.f32.mrb[35].mxu1  ;;  %v1404_v57 = vpop.f32.mrb[51].mxu0  ;;  %v2280_v61 = vmul.f32 -1.442695, %v1408_v20 }
 0x5f6   :  { %v2279_v60 = vmul.f32 -1.442695, %v1407_v31  ;;  %v3567_v17 = vld [vmem:[%s3821_s6 + $0x88] ss:$16 sps:$4 sm:$0xff]   ;;  %v3579_v20 = vld [vmem:[%s3821_s6 + $0xac] ss:$16 sps:$4 sm:$0xff]  }
 0x5f7   :  { %2593 = vpow2.f32 %v2278_v43  ;;  %v3585_v21 = vld [vmem:[%s3821_s6 + $0xa0] ss:$16 sps:$4 sm:$0xff]   ;;  %v3591_v27 = vld [vmem:[%s3821_s6 + $0xa8] ss:$16 sps:$4 sm:$0xff]  }
 0x5f8   :  { %2595 = vpow2.f32 %v2279_v60  ;;  %v3872_v31 = vld [vmem:[#allocation19_spill] sm:$0xff]  ;;  %v3873_v32 = vld [vmem:[#allocation20_spill] sm:$0xff]  ;;  %v3874_v40 = vld [vmem:[#allocation21_spill] sm:$0xff] }
 0x5f9   :  { %2597 = vtanh.f32 %v1409_v39  ;;  %v3875_v42 = vld [vmem:[#allocation22_spill] sm:$0xff] }
 0x5fa   :  { %2599 = vpow2.f32 %v2280_v61 }
 0x601   :  { %v2594_v8 = vpop.eup %2593 }
 0x602   :  { %v1419_v11 = vadd.f32 1.0, %v2594_v8  ;;  %v2596_v4 = vpop.eup %2595 }
 0x603   :  { %v1420_v26 = vadd.f32 1.0, %v2596_v4  ;;  %v2598_v19 = vpop.eup %2597 }
 0x604   :  { %2601 = vrcp.f32 %v1419_v11  ;;  %v2600_v62 = vpop.eup %2599 }
 0x605   :  { %2603 = vrcp.f32 %v1420_v26  ;;  %v1421_v14 = vadd.f32 1.0, %v2600_v62 }
 0x607   :  { %2605 = vrcp.f32 %v1421_v14 }
 0x60e   :  { %v2602_v2 = vpop.eup %2601 }
 0x60f   :  { %v1430_v46 = vmul.f32 %v2602_v2, %v2598_v19  ;;  %v2604_v3 = vpop.eup %2603 }
 0x610   :  { %v1429_v34 = vmul.f32 %v2604_v3, %v3402_v45  ;;  %v3525_v45 = vld [vmem:[%s3821_s6 + $0x64] ss:$16 sps:$4 sm:$0xff]  }
 0x611   :  { %v2606_v24 = vpop.eup %2605 }
 0x612   :  { %v3453_v16 = vadd.f32 %v1430_v46, %v1429_v34 }
 0x614   :  { %2607 = vtanh.f32 %v3453_v16 }
 0x61e   :  { %v2608_v15 = vpop.eup %2607 }
 0x61f   :  { %v3456_v47 = vmul.f32 %v2608_v15, %v2606_v24 }
 0x621   :  { %v1441_v35 = vpack.c.bf16 %v3456_v47, %v3456_v47 }
 0x623   :  { %1475 = vmatmul.mubr.bf16.vlgmr.msra.gmra.mrb[36].mxu1 %v1441_v35  ;;  %1516 = vmatmul.mubr.bf16.vlgmr.msra.gmra.mrb[52].mxu0 %v1441_v35 }
 0x624   :  { %1561 = vmatpush1.bf16.msra.mxu1 %v3463_v63  ;;  %1602 = vmatpush1.bf16.msra.mxu0 %v3469_v12 }
 0x625   :  { %1562 = vmatprep.subr.bf16.mxu1 %v3475_v52  ;;  %1603 = vmatprep.subr.bf16.mxu0 %v3481_v49 }
 0x626   :  { %1592 = vmatprep.mubr.bf16.mxu1 %v3861_v1  ;;  %1633 = vmatprep.mubr.bf16.mxu0 %v3861_v1 }
 0x628   :  { %1563 = vmatpush1.bf16.msra.mxu1 %v3489_v55  ;;  %1604 = vmatpush1.bf16.msra.mxu0 %v3495_v38 }
 0x629   :  { %1564 = vmatprep.subr.bf16.mxu1 %v3501_v0  ;;  %1605 = vmatprep.subr.bf16.mxu0 %v3507_v54 }
 0x62c   :  { %1565 = vmatpush1.bf16.msra.mxu1 %v3513_v41  ;;  %1606 = vmatpush1.bf16.msra.mxu0 %v3519_v44 }
 0x62d   :  { %1566 = vmatprep.subr.bf16.mxu1 %v3525_v45  ;;  %1607 = vmatprep.subr.bf16.mxu0 %v3531_v48 }
 0x630   :  { %1567 = vmatpush1.bf16.msra.mxu1 %v3537_v51  ;;  %1608 = vmatpush1.bf16.msra.mxu0 %v3543_v59 }
 0x631   :  { %1568 = vmatprep.subr.bf16.mxu1 %v3549_v6  ;;  %1609 = vmatprep.subr.bf16.mxu0 %v3555_v9 }
 0x634   :  { %1569 = vmatpush1.bf16.msra.mxu1 %v3561_v10  ;;  %1610 = vmatpush1.bf16.msra.mxu0 %v3567_v17 }
 0x635   :  { %1570 = vmatprep.subr.bf16.mxu1 %v3573_v18  ;;  %1611 = vmatprep.subr.bf16.mxu0 %v3579_v20 }
 0x638   :  { %1571 = vmatpush1.bf16.msra.mxu1 %v3585_v21  ;;  %1612 = vmatpush1.bf16.msra.mxu0 %v3591_v27 }
 0x639   :  { %1572 = vmatprep.subr.bf16.mxu1 %v3093_v53  ;;  %1613 = vmatprep.subr.bf16.mxu0 %v3098_v13 }
 0x63c   :  { %1573 = vmatpush1.bf16.msra.mxu1 %v3109_v22  ;;  %1614 = vmatpush1.bf16.msra.mxu0 %v3114_v23 }
 0x63d   :  { %1574 = vmatprep.subr.bf16.mxu1 %v3121_v25  ;;  %1615 = vmatprep.subr.bf16.mxu0 %v3126_v29 }
 0x640   :  { %1575 = vmatpush1.bf16.msra.mxu1 %v3133_v30  ;;  %1616 = vmatpush1.bf16.msra.mxu0 %v3138_v33 }
 0x641   :  { %1678 = vmatprep.subr.bf16.mxu1 %v3393_v7  ;;  %1719 = vmatprep.subr.bf16.mxu0 %v3445_v5 }
 0x6f6   :  { %v1476_v28 = vpop.f32.mrb[36].mxu1  ;;  %v1517_v53 = vpop.f32.mrb[52].mxu0 }
 0x6f7   :  { %v1524_v13 = vadd.f32 %v1476_v28, %v3872_v31  ;;  %v1526_v22 = vadd.f32 %v1517_v53, %v3873_v32  ;;  %v1478_v39 = vpop.f32.mrb[37].mxu1  ;;  %v1519_v23 = vpop.f32.mrb[53].mxu0 }
 0x6f8   :  { %v1525_v25 = vadd.f32 %v1478_v39, %v3874_v40  ;;  %v1527_v29 = vadd.f32 %v1519_v23, %v3875_v42  ;;  %v1480_v43 = vpop.f32.mrb[38].mxu1  ;;  %v1521_v30 = vpop.f32.mrb[54].mxu0 }
 0x6f9   :  { %v2281_v56 = vmul.f32 -1.442695, %v1524_v13  ;;  %v1481_v33 = vpop.f32.mrb[39].mxu1  ;;  %v1522_v57 = vpop.f32.mrb[55].mxu0  ;;  %v2283_v5 = vmul.f32 -1.442695, %v1526_v22 }
 0x6fa   :  { %v2282_v7 = vmul.f32 -1.442695, %v1525_v25 }
 0x6fb   :  { %2609 = vpow2.f32 %v2281_v56 }
 0x6fc   :  { %2611 = vpow2.f32 %v2282_v7 }
 0x6fd   :  { %2613 = vtanh.f32 %v1527_v29 }
 0x6fe   :  { %2615 = vpow2.f32 %v2283_v5 }
 0x705   :  { %v2610_v60 = vpop.eup %2609 }
 0x706   :  { %v1537_v61 = vadd.f32 1.0, %v2610_v60  ;;  %v2612_v8 = vpop.eup %2611  ;;  %v2506_v60 = vld [vmem:[%s3826_s8] sm:$0xff]  }
 0x707   :  { %v1538_v11 = vadd.f32 1.0, %v2612_v8  ;;  %v2614_v4 = vpop.eup %2613  ;;  %v2507_v8 = vld [vmem:[%s3826_s8 + $0x48] sm:$0xff]  }
 0x708   :  { %2617 = vrcp.f32 %v1537_v61  ;;  %v2616_v26 = vpop.eup %2615 }
 0x709   :  { %2619 = vrcp.f32 %v1538_v11  ;;  %v1539_v46 = vadd.f32 1.0, %v2616_v26  ;;  %v1809_v11 = vpack.c.bf16 %v3308_v36, %v3262_v37  ;;  %v2509_v26 = vld [vmem:[%s3826_s8 + $0x50] sm:$0xff]   ;;  %v2511_v37 = vld [vmem:[%s3826_s8 + $0x58] sm:$0xff]  }
 0x70a   :  { %v2512_v36 = vld [vmem:[%s3826_s8 + $0x18] sm:$0xff]  }
 0x70b   :  { %2621 = vrcp.f32 %v1539_v46  ;;  %v2515_v46 = vld [vmem:[%s3826_s8 + $0x68] sm:$0xff]  }
 0x712   :  { %v2618_v19 = vpop.eup %2617 }
 0x713   :  { %v1548_v62 = vmul.f32 %v2618_v19, %v2614_v4  ;;  %v2620_v2 = vpop.eup %2619  ;;  %v2508_v4 = vld [vmem:[%s3826_s8 + $0x8] sm:$0xff]   ;;  %v2510_v19 = vld [vmem:[%s3826_s8 + $0x10] sm:$0xff]  }
 0x714   :  { %v1547_v3 = vmul.f32 %v2620_v2, %v3453_v16  ;;  %v2682_v16 = vld [vmem:[%s3821_s6 + $0xcc] ss:$16 sps:$4 sm:$0xff]   ;;  %v2514_v2 = vld [vmem:[%s3826_s8 + $0x20] sm:$0xff]  }
 0x715   :  { %v2622_v34 = vpop.eup %2621 }
 0x716   :  { %v3609_v14 = vadd.f32 %v1548_v62, %v1547_v3  ;;  %v2513_v62 = vld [vmem:[%s3826_s8 + $0x60] sm:$0xff]   ;;  %v2516_v3 = vld [vmem:[%s3826_s8 + $0x28] sm:$0xff]  }
 0x718   :  { %2623 = vtanh.f32 %v3609_v14 }
 0x722   :  { %v2624_v24 = vpop.eup %2623 }
 0x723   :  { %v3612_v15 = vmul.f32 %v2624_v24, %v2622_v34  ;;  %v2518_v34 = vld [vmem:[%s3826_s8 + $0x30] sm:$0xff]   ;;  %v2519_v24 = vld [vmem:[%s3826_s8 + $0x78] sm:$0xff]  }
 0x725   :  { %v1559_v35 = vpack.c.bf16 %v3612_v15, %v3612_v15 }
 0x727   :  { %1593 = vmatmul.mubr.bf16.vlgmr.msra.gmra.mrb[40].mxu1 %v1559_v35  ;;  %1634 = vmatmul.mubr.bf16.vlgmr.msra.gmra.mrb[56].mxu0 %v1559_v35  ;;  %v2520_v35 = vld [vmem:[%s3826_s8 + $0x38] sm:$0xff]  }
 0x728   :  { %1679 = vmatpush1.bf16.msra.mxu1 %v3463_v63  ;;  %1720 = vmatpush1.bf16.msra.mxu0 %v3469_v12  ;;  %v2683_v63 = vld [vmem:[%s3821_s6 + $0xc0] ss:$16 sps:$4 sm:$0xff]   ;;  %v2684_v12 = vld [vmem:[%s3821_s6 + $0xc8] ss:$16 sps:$4 sm:$0xff]  }
 0x729   :  { %1680 = vmatprep.subr.bf16.mxu1 %v3475_v52  ;;  %1721 = vmatprep.subr.bf16.mxu0 %v3481_v49  ;;  %v2685_v52 = vld [vmem:[%s3821_s6 + $0xe4] ss:$16 sps:$4 sm:$0xff]   ;;  %v2686_v49 = vld [vmem:[%s3821_s6 + $0xec] ss:$16 sps:$4 sm:$0xff]  }
 0x72a   :  { %1710 = vmatprep.mubr.bf16.mxu1 %v3861_v1  ;;  %1751 = vmatprep.mubr.bf16.mxu0 %v3861_v1  ;;  %v2681_v1 = vld [vmem:[%s3821_s6 + $0xc4] ss:$16 sps:$4 sm:$0xff]  }
 0x72c   :  { %1681 = vmatpush1.bf16.msra.mxu1 %v3489_v55  ;;  %1722 = vmatpush1.bf16.msra.mxu0 %v3495_v38  ;;  %v2687_v55 = vld [vmem:[%s3821_s6 + $0xe0] ss:$16 sps:$4 sm:$0xff]   ;;  %v2688_v38 = vld [vmem:[%s3821_s6 + $0xe8] ss:$16 sps:$4 sm:$0xff]  }
 0x72d   :  { %1682 = vmatprep.subr.bf16.mxu1 %v3501_v0  ;;  %1723 = vmatprep.subr.bf16.mxu0 %v3507_v54  ;;  %v2505_v0 = vld [vmem:[%s3826_s8 + $0x40] sm:$0xff]  }
 0x730   :  { %1683 = vmatpush1.bf16.msra.mxu1 %v3513_v41  ;;  %1724 = vmatpush1.bf16.msra.mxu0 %v3519_v44  ;;  %v3876_v44 = vld [vmem:[#allocation23_spill] sm:$0xff] }
 0x731   :  { %1684 = vmatprep.subr.bf16.mxu1 %v3525_v45  ;;  %1725 = vmatprep.subr.bf16.mxu0 %v3531_v48  ;;  %v3877_v48 = vld [vmem:[#allocation24_spill] sm:$0xff] }
 0x734   :  { %1685 = vmatpush1.bf16.msra.mxu1 %v3537_v51  ;;  %1726 = vmatpush1.bf16.msra.mxu0 %v3543_v59 }
 0x735   :  { %1686 = vmatprep.subr.bf16.mxu1 %v3549_v6  ;;  %1727 = vmatprep.subr.bf16.mxu0 %v3555_v9  ;;  %v3878_v9 = vld [vmem:[#allocation25_spill] sm:$0xff] }
 0x738   :  { %1687 = vmatpush1.bf16.msra.mxu1 %v3561_v10  ;;  %1728 = vmatpush1.bf16.msra.mxu0 %v3567_v17  ;;  %v3879_v17 = vld [vmem:[#allocation26_spill] sm:$0xff] }
 0x739   :  { %1688 = vmatprep.subr.bf16.mxu1 %v3573_v18  ;;  %1729 = vmatprep.subr.bf16.mxu0 %v3579_v20 }
 0x73c   :  { %1689 = vmatpush1.bf16.msra.mxu1 %v3585_v21  ;;  %1730 = vmatpush1.bf16.msra.mxu0 %v3591_v27 }
 0x73d   :  { %1690 = vmatprep.subr.bf16.mxu1 %v2681_v1  ;;  %1731 = vmatprep.subr.bf16.mxu0 %v2682_v16  ;;  %v1811_v1 = vpack.c.bf16 %v3405_v58, %v3354_v50  ;;  %v3880_v16 = vld [vmem:[#allocation5_spill] sm:$0xff]  ;;  %v2523_v58 = vld [vmem:[%s3827_s10 + $0x10] sm:$0xff]  }
 0x73e   :  { %v2522_v50 = vld [vmem:[%s3827_s10 + $0x8] sm:$0xff]  }
 0x740   :  { %1691 = vmatpush1.bf16.msra.mxu1 %v2683_v63  ;;  %1732 = vmatpush1.bf16.msra.mxu0 %v2684_v12  ;;  %v1813_v63 = vpack.c.bf16 %v3612_v15, %v3456_v47  ;;  %v3881_v12 = vld [vmem:[#allocation6_spill] sm:$0xff]  ;;  %v2524_v47 = vld [vmem:[%s3827_s10 + $0x18] sm:$0xff]   ;;  %v2525_v15 = vld [vmem:[%s3827_s10 + $0x20] sm:$0xff]  }
 0x741   :  { %1692 = vmatprep.subr.bf16.mxu1 %v2685_v52  ;;  %1733 = vmatprep.subr.bf16.mxu0 %v2686_v49  ;;  %v3882_v52 = vld [vmem:[#allocation7_spill] sm:$0xff]  ;;  %v2521_v49 = vld [vmem:[%s3827_s10] sm:$0xff]  }
 0x744   :  { %1693 = vmatpush1.bf16.msra.mxu1 %v2687_v55  ;;  %1734 = vmatpush1.bf16.msra.mxu0 %v2688_v38  ;;  %v2526_v55 = vld [vmem:[%s3827_s10 + $0x28] sm:$0xff]   ;;  %v2527_v38 = vld [vmem:[%s3827_s10 + $0x30] sm:$0xff]  }
 0x745   :  { %2316 = vmatprep.subr.bf16.mxu1 %v2505_v0  ;;  %2368 = vmatprep.subr.bf16.mxu0 %v2521_v49  ;;  %v2528_v0 = vld [vmem:[%s3827_s10 + $0x38] sm:$0xff]  }
 0x7fa   :  { %v1594_v54 = vpop.f32.mrb[40].mxu1  ;;  %v1635_v41 = vpop.f32.mrb[56].mxu0 }
 0x7fb   :  { %v1642_v45 = vadd.f32 %v1594_v54, %v3876_v44  ;;  %v1644_v51 = vadd.f32 %v1635_v41, %v3877_v48  ;;  %v1596_v59 = vpop.f32.mrb[41].mxu1  ;;  %v1637_v6 = vpop.f32.mrb[57].mxu0  ;;  %v3883_v44 = vld [vmem:[#allocation27_spill] sm:$0xff]  ;;  %v3884_v48 = vld [vmem:[#allocation28_spill] sm:$0xff] }
 0x7fc   :  { %v1643_v10 = vadd.f32 %v1596_v59, %v3878_v9  ;;  %v1645_v18 = vadd.f32 %v1637_v6, %v3879_v17  ;;  %v1598_v20 = vpop.f32.mrb[42].mxu1  ;;  %v1639_v21 = vpop.f32.mrb[58].mxu0  ;;  %v3885_v9 = vld [vmem:[#allocation29_spill] sm:$0xff]  ;;  %v3886_v17 = vld [vmem:[#allocation30_spill] sm:$0xff] }
 0x7fd   :  { %v2284_v27 = vmul.f32 -1.442695, %v1642_v45  ;;  %v1599_v28 = vpop.f32.mrb[43].mxu1  ;;  %v1640_v53 = vpop.f32.mrb[59].mxu0  ;;  %v2286_v13 = vmul.f32 -1.442695, %v1644_v51 }
 0x7fe   :  { %v2285_v31 = vmul.f32 -1.442695, %v1643_v10 }
 0x7ff   :  { %2625 = vpow2.f32 %v2284_v27 }
 0x800   :  { %2627 = vpow2.f32 %v2285_v31 }
 0x801   :  { %2629 = vtanh.f32 %v1645_v18 }
 0x802   :  { %2631 = vpow2.f32 %v2286_v13 }
 0x809   :  { %v2626_v32 = vpop.eup %2625 }
 0x80a   :  { %v1655_v22 = vadd.f32 1.0, %v2626_v32  ;;  %v2628_v39 = vpop.eup %2627 }
 0x80b   :  { %v1656_v23 = vadd.f32 1.0, %v2628_v39  ;;  %v2630_v40 = vpop.eup %2629 }
 0x80c   :  { %2633 = vrcp.f32 %v1655_v22  ;;  %v2632_v25 = vpop.eup %2631 }
 0x80d   :  { %2635 = vrcp.f32 %v1656_v23  ;;  %v1657_v30 = vadd.f32 1.0, %v2632_v25 }
 0x80f   :  { %2637 = vrcp.f32 %v1657_v30 }
 0x816   :  { %v2634_v42 = vpop.eup %2633 }
 0x817   :  { %v1666_v29 = vmul.f32 %v2634_v42, %v2630_v40  ;;  %v2636_v43 = vpop.eup %2635 }
 0x818   :  { %v1665_v56 = vmul.f32 %v2636_v43, %v3609_v14  ;;  %v2517_v14 = vld [vmem:[%s3826_s8 + $0x70] sm:$0xff]  }
 0x819   :  { %v2638_v57 = vpop.eup %2637 }
 0x81a   :  { %v3672_v33 = vadd.f32 %v1666_v29, %v1665_v56 }
 0x81c   :  { %2639 = vtanh.f32 %v3672_v33 }
 0x826   :  { %v2640_v7 = vpop.eup %2639 }
 0x827   :  { %v3675_v5 = vmul.f32 %v2640_v7, %v2638_v57 }
 0x829   :  { %v1677_v61 = vpack.c.bf16 %v3675_v5, %v3675_v5 }
 0x82b   :  { %1711 = vmatmul.mubr.bf16.vlgmr.msra.gmra.mrb[44].mxu1 %v1677_v61  ;;  %1752 = vmatmul.mubr.bf16.vlgmr.msra.gmra.mrb[60].mxu0 %v1677_v61 }
 0x82c   :  { %2317 = vmatpush3.bf16.msra.mxu1 %v2506_v60  ;;  %1983 = vmatprep.mubr.bf16.mxu1 %v1809_v11  ;;  %v3765_v60 = vld [vmem:[%s3828_s9] ss:$0 sm:$0xff] }
 0x82d   :  { %2318 = vmatprep.subr.bf16.mxu1 %v2507_v8  ;;  %2369 = vmatpush3.bf16.msra.mxu0 %v2521_v49 }
 0x82e   :  { %2370 = vmatprep.subr.bf16.mxu0 %v2522_v50 }
 0x830   :  { %2319 = vmatpush3.bf16.msra.mxu1 %v2508_v4 }
 0x831   :  { %2320 = vmatprep.subr.bf16.mxu1 %v2509_v26  ;;  %2371 = vmatpush3.bf16.msra.mxu0 %v2522_v50 }
 0x832   :  { %2372 = vmatprep.subr.bf16.mxu0 %v2523_v58 }
 0x834   :  { %2321 = vmatpush3.bf16.msra.mxu1 %v2510_v19 }
 0x835   :  { %2322 = vmatprep.subr.bf16.mxu1 %v2511_v37  ;;  %2373 = vmatpush3.bf16.msra.mxu0 %v2523_v58 }
 0x836   :  { %2374 = vmatprep.subr.bf16.mxu0 %v2524_v47 }
 0x838   :  { %2323 = vmatpush3.bf16.msra.mxu1 %v2512_v36 }
 0x839   :  { %2324 = vmatprep.subr.bf16.mxu1 %v2513_v62  ;;  %2375 = vmatpush3.bf16.msra.mxu0 %v2524_v47 }
 0x83a   :  { %2376 = vmatprep.subr.bf16.mxu0 %v2525_v15 }
 0x83c   :  { %2325 = vmatpush3.bf16.msra.mxu1 %v2514_v2 }
 0x83d   :  { %2326 = vmatprep.subr.bf16.mxu1 %v2515_v46  ;;  %2377 = vmatpush3.bf16.msra.mxu0 %v2525_v15 }
 0x83e   :  { %2378 = vmatprep.subr.bf16.mxu0 %v2526_v55 }
 0x840   :  { %2327 = vmatpush3.bf16.msra.mxu1 %v2516_v3 }
 0x841   :  { %2328 = vmatprep.subr.bf16.mxu1 %v2517_v14  ;;  %2379 = vmatpush3.bf16.msra.mxu0 %v2526_v55 }
 0x842   :  { %2380 = vmatprep.subr.bf16.mxu0 %v2527_v38 }
 0x844   :  { %2329 = vmatpush3.bf16.msra.mxu1 %v2518_v34 }
 0x845   :  { %2330 = vmatprep.subr.bf16.mxu1 %v2519_v24  ;;  %2381 = vmatpush3.bf16.msra.mxu0 %v2527_v38 }
 0x846   :  { %2382 = vmatprep.subr.bf16.mxu0 %v2528_v0 }
 0x848   :  { %2331 = vmatpush3.bf16.msra.mxu1 %v2520_v35 }
 0x849   :  { %2383 = vmatpush3.bf16.msra.mxu0 %v2528_v0 }
 0x84b   :  { %1984 = vmatmul.mubr.bf16.vlgmr.msra.gmra.mrb[48].mxu1 %v3880_v16 }
 0x84c   :  { %1991 = vmatprep.mubr.bf16.mxu1 %v1811_v1 }
 0x853   :  { %1992 = vmatmul.mubr.bf16.gmra.mrb[52].mxu1 %v3881_v12 }
 0x854   :  { %1999 = vmatprep.mubr.bf16.mxu1 %v1813_v63 }
 0x85b   :  { %2000 = vmatmul.mubr.bf16.gmra.mrb[56].mxu1 %v3882_v52 }
 0x8fe   :  { %v1712_v54 = vpop.f32.mrb[44].mxu1  ;;  %v1753_v41 = vpop.f32.mrb[60].mxu0 }
 0x8ff   :  { %v1760_v45 = vadd.f32 %v1712_v54, %v3883_v44  ;;  %v1762_v51 = vadd.f32 %v1753_v41, %v3884_v48  ;;  %v1714_v59 = vpop.f32.mrb[45].mxu1  ;;  %v1755_v6 = vpop.f32.mrb[61].mxu0  ;;  %v3887_v54 = vld [vmem:[#allocation8_spill] sm:$0xff] }
 0x900   :  { %v1761_v10 = vadd.f32 %v1714_v59, %v3885_v9  ;;  %v1763_v18 = vadd.f32 %v1755_v6, %v3886_v17  ;;  %v1716_v20 = vpop.f32.mrb[46].mxu1  ;;  %v1757_v21 = vpop.f32.mrb[62].mxu0 }
 0x901   :  { %v2287_v27 = vmul.f32 -1.442695, %v1760_v45  ;;  %v1717_v28 = vpop.f32.mrb[47].mxu1  ;;  %v1758_v53 = vpop.f32.mrb[63].mxu0  ;;  %v2289_v13 = vmul.f32 -1.442695, %v1762_v51 }
 0x902   :  { %v2288_v31 = vmul.f32 -1.442695, %v1761_v10 }
 0x903   :  { %2641 = vpow2.f32 %v2287_v27 }
 0x904   :  { %2643 = vpow2.f32 %v2288_v31 }
 0x905   :  { %2645 = vtanh.f32 %v1763_v18 }
 0x906   :  { %2647 = vpow2.f32 %v2289_v13 }
 0x90d   :  { %v2642_v32 = vpop.eup %2641 }
 0x90e   :  { %v1773_v22 = vadd.f32 1.0, %v2642_v32  ;;  %v2644_v39 = vpop.eup %2643 }
 0x90f   :  { %v1774_v23 = vadd.f32 1.0, %v2644_v39  ;;  %v2646_v40 = vpop.eup %2645 }
 0x910   :  { %2649 = vrcp.f32 %v1773_v22  ;;  %v2648_v25 = vpop.eup %2647 }
 0x911   :  { %2651 = vrcp.f32 %v1774_v23  ;;  %v1775_v30 = vadd.f32 1.0, %v2648_v25 }
 0x913   :  { %2653 = vrcp.f32 %v1775_v30 }
 0x91a   :  { %v2650_v42 = vpop.eup %2649 }
 0x91b   :  { %v1784_v29 = vmul.f32 %v2650_v42, %v2646_v40  ;;  %v2652_v43 = vpop.eup %2651 }
 0x91c   :  { %v1783_v56 = vmul.f32 %v2652_v43, %v3672_v33 }
 0x91d   :  { %v2654_v24 = vpop.eup %2653 }
 0x91e   :  { %v2332_v57 = vpop.f32.mrb[48].mxu1  ;;  %v1785_v7 = vadd.f32 %v1784_v29, %v1783_v56 }
 0x91f   :  { %v2333_v61 = vpop.f32.mrb[49].mxu1 }
 0x920   :  { %v2334_v8 = vadd.f32 %v2333_v61, %v2332_v57  ;;  %v2335_v11 = vpop.f32.mrb[50].mxu1  ;;  %2655 = vtanh.f32 %v1785_v7  ;;  %1791 = vst [vmem:[%s3829_s14] sm:$0xff] %v1785_v7 }
 0x921   :  { %v2336_v4 = vpop.f32.mrb[51].mxu1 }
 0x922   :  { %v1986_v26 = vadd.f32 %v2334_v8, %v3765_v60  ;;  %v2337_v33 = vadd.f32 %v2336_v4, %v2335_v11 }
 0x924   :  { %v1989_v19 = vadd.f32 %v2337_v33, %v3765_v60  ;;  %v2016_v37 = vmax.f32 %v1986_v26, 0.0 }
 0x926   :  { %v2017_v36 = vmax.f32 %v1989_v19, 0.0  ;;  %v2338_v62 = vpop.f32.mrb[52].mxu1 }
 0x927   :  { %v2339_v2 = vpop.f32.mrb[53].mxu1 }
 0x928   :  { %v2340_v46 = vadd.f32 %v2339_v2, %v2338_v62  ;;  %v2341_v3 = vpop.f32.mrb[54].mxu1  ;;  %v2024_v14 = vpack.c.bf16 %v2017_v36, %v2016_v37 }
 0x929   :  { %v2342_v34 = vpop.f32.mrb[55].mxu1 }
 0x92a   :  { %v1994_v35 = vadd.f32 %v2340_v46, %v3765_v60  ;;  %v2343_v1 = vadd.f32 %v2342_v34, %v2341_v3  ;;  %2384 = vmatprep.mubr.bf16.mxu0 %v2024_v14  ;;  %v2656_v16 = vpop.eup %2655 }
 0x92b   :  { %v1787_v12 = vmul.f32 %v2656_v16, %v2654_v24 }
 0x92c   :  { %v1997_v63 = vadd.f32 %v2343_v1, %v3765_v60  ;;  %v2018_v52 = vmax.f32 %v1994_v35, 0.0 }
 0x92d   :  { %1790 = vst [vmem:[%s3830_s13] sm:$0xff] %v1787_v12  ;;  %v1815_v58 = vpack.c.bf16 %v1787_v12, %v3675_v5  ;;  %v20_v5 = vstv %s3831_s11 }
 0x92e   :  { %v2019_v49 = vmax.f32 %v1997_v63, 0.0  ;;  %v2344_v50 = vpop.f32.mrb[56].mxu1  ;;  %21 = vst [vmem:[#allocation4] sm:$0x1] %v20_v5 }
 0x92f   :  { %v2345_v47 = vpop.f32.mrb[57].mxu1  ;;  %2007 = vmatprep.mubr.bf16.mxu1 %v1815_v58 }
 0x930   :  { %v2025_v15 = vpack.c.bf16 %v2019_v49, %v2018_v52  ;;  %v2346_v55 = vadd.f32 %v2345_v47, %v2344_v50  ;;  %v2347_v38 = vpop.f32.mrb[58].mxu1  ;;  %2008 = vmatmul.mubr.bf16.gmra.mrb[60].mxu1 %v3887_v54 }
 0x931   :  { %v2348_v0 = vpop.f32.mrb[59].mxu1 }
 0x932   :  { %v2002_v41 = vadd.f32 %v2346_v55, %v3765_v60  ;;  %v2349_v44 = vadd.f32 %v2348_v0, %v2347_v38  ;;  %2385 = vmatmul.mubr.bf16.vlgmr.msra.gmra.mrb[64].mxu0 %v2025_v15 }
 0x934   :  { %v2005_v45 = vadd.f32 %v2349_v44, %v3765_v60  ;;  %v2020_v48 = vmax.f32 %v2002_v41, 0.0 }
 0x935   :  { %v2307_v6 = vld [vmem:[#allocation4] ss:$0 sm:$0xff] }
 0x936   :  { %v2021_v51 = vmax.f32 %v2005_v45, 0.0 }
 0x938   :  { %v2026_v59 = vpack.c.bf16 %v2021_v51, %v2020_v48 }
 0x93a   :  { %2388 = vmatprep.mubr.bf16.mxu0 %v2026_v59 }
 0xa03   :  { %v2350_v9 = vpop.f32.mrb[60].mxu1 }
 0xa04   :  { %v2351_v10 = vpop.f32.mrb[61].mxu1 }
 0xa05   :  { %v2386_v17 = vpop.f32.mrb[64].mxu0  ;;  %v2352_v18 = vadd.f32 %v2351_v10, %v2350_v9  ;;  %v2353_v21 = vpop.f32.mrb[62].mxu1 }
 0xa06   :  { %v2142_v20 = vadd.f32 %v2386_v17, %v2307_v6  ;;  %v2133_v27 = vpop.f32.mrb[65].mxu0  ;;  %v2354_v53 = vpop.f32.mrb[63].mxu1 }
 0xa07   :  { %v2134_v28 = vadd.f32 %v2307_v6, %v2133_v27  ;;  %v2387_v31 = vpop.f32.mrb[66].mxu0  ;;  %v2010_v13 = vadd.f32 %v2352_v18, %v3765_v60  ;;  %v2355_v32 = vadd.f32 %v2354_v53, %v2353_v21 }
 0xa08   :  { %2167 = vst.msk [vmem:[%s3832_s12 + $0x10] sm:$0xff] %vm2164_vm2, %v2142_v20  ;;  %v2145_v22 = vadd.f32 %v2387_v31, %v2307_v6  ;;  %v2136_v39 = vpop.f32.mrb[67].mxu0 }
 0xa09   :  { %2165 = vst.msk [vmem:[%s3832_s12] sm:$0xff] %vm2164_vm2, %v2134_v28  ;;  %v2137_v23 = vadd.f32 %v2307_v6, %v2136_v39  ;;  %v2013_v40 = vadd.f32 %v2355_v32, %v3765_v60  ;;  %v2022_v25 = vmax.f32 %v2010_v13, 0.0 }
 0xa0a   :  { %2168 = vst.msk [vmem:[%s3832_s12 + $0x18] sm:$0xff] %vm2164_vm2, %v2145_v22 }
 0xa0b   :  { %2166 = vst.msk [vmem:[%s3832_s12 + $0x8] sm:$0xff] %vm2164_vm2, %v2137_v23  ;;  %v2023_v42 = vmax.f32 %v2013_v40, 0.0 }
 0xa0d   :  { %v2027_v29 = vpack.c.bf16 %v2023_v42, %v2022_v25 }
 0xa0f   :  { %2389 = vmatmul.mubr.bf16.gmra.mrb[68].mxu0 %v2027_v29 }
 0xae2   :  { %v2390_v43 = vpop.f32.mrb[68].mxu0 }
 0xae3   :  { %v2158_v30 = vadd.f32 %v2390_v43, %v2307_v6  ;;  %v2149_v56 = vpop.f32.mrb[69].mxu0 }
 0xae4   :  { %v2150_v57 = vadd.f32 %v2307_v6, %v2149_v56  ;;  %v2391_v7 = vpop.f32.mrb[70].mxu0 }
 0xae5   :  { %2171 = vst.msk [vmem:[%s3832_s12 + $0x30] sm:$0xff] %vm2164_vm2, %v2158_v30  ;;  %v2161_v60 = vadd.f32 %v2391_v7, %v2307_v6  ;;  %v2152_v61 = vpop.f32.mrb[71].mxu0 }
 0xae6   :  { %2169 = vst.msk [vmem:[%s3832_s12 + $0x20] sm:$0xff] %vm2164_vm2, %v2150_v57  ;;  %v2153_v8 = vadd.f32 %v2307_v6, %v2152_v61 }
 0xae7   :  { %2172 = vst.msk [vmem:[%s3832_s12 + $0x38] sm:$0xff] %vm2164_vm2, %v2161_v60 }
 0xae8   :  { %2170 = vst.msk [vmem:[%s3832_s12 + $0x28] sm:$0xff] %vm2164_vm2, %v2153_v8 }

</bundles_post_ra>
